<compile_context>
chip_gen: v7x
topology: tpu7x:2x2x1
jax: 0.10.0
libtpu: 0.0.40
codegen_flags: <defaults>
</compile_context>

<pallas_src>
import functools

import jax
import jax.numpy as jnp
from jax import lax
from jax.experimental import pallas as pl
from jax.experimental.pallas import tpu as pltpu


def rbm_kernel(x_ref, w_ref, b_ref, c_ref, u_ref, n_ref, xk_ref, mean_ref, *, k):
    """Full k-step Gibbs chain for one batch tile.

    x_ref    : (TILE_N, D) f32   starting visible units
    w_ref    : (F, D)      bf16  RBM weights (resident across the grid)
    b_ref    : (1, F)      f32   hidden bias
    c_ref    : (1, D)      f32   visible bias
    u_ref    : (k, TILE_N, F) f32  uniforms for Bernoulli hidden samples
    n_ref    : (k, TILE_N, D) f32  standard normals for Gaussian visible samples
    xk_ref   : (TILE_N, D) f32   output: x_k
    mean_ref : (TILE_N, D) f32   output: P_x_h(h_k) = h_k @ W + c (last step)
    """
    W = w_ref[...]                      # (F, D) bf16
    tile_n = x_ref.shape[0]
    F, D = w_ref.shape

    # Hoist bias broadcasts out of the unrolled loop (JAX does not CSE them).
    b_b = jnp.broadcast_to(b_ref[...], (tile_n, F)).astype(jnp.float32)
    c_b = jnp.broadcast_to(c_ref[...], (tile_n, D)).astype(jnp.float32)

    x_k = x_ref[...]
    mean = c_b
    # k is a small static int -> unrolled Gibbs chain.
    for step in range(k):
        # P(h | x_k) = sigmoid(x_k @ W^T + b): contract over D directly
        # (no explicit transpose); bf16 operands, f32 MXU accumulation.
        act_h = lax.dot_general(
            x_k.astype(jnp.bfloat16), W,
            dimension_numbers=(((1,), (1,)), ((), ())),
            preferred_element_type=jnp.float32) + b_b
        p_h = jax.nn.sigmoid(act_h)
        # h_k ~ Bernoulli(p_h); values are exactly 0/1 so bf16 cast is lossless.
        h_k = (u_ref[step] < p_h).astype(jnp.bfloat16)
        # mean = P_x_h(h_k) = h_k @ W + c
        mean = jnp.dot(h_k, W, preferred_element_type=jnp.float32) + c_b
        # x_k ~ Normal(mean, 1)
        x_k = mean + n_ref[step]

    xk_ref[...] = x_k
    mean_ref[...] = mean


def rbm_forward(x, W, b, c, *, k, key):
    """Pallas wrapper: returns (x_k, P_x_h(h_k)) like RBM.forward."""
    assert k >= 1, "RBM.forward requires k >= 1 (h_k is undefined for k=0)"
    N, D = x.shape
    F = W.shape[0]

    # Batch tile: lane/sublane friendly (multiple of 8 rows; 128 preferred).
    tile_n = 128 if N % 128 == 0 else N
    grid = (N // tile_n,)

    # Host-side random draws (deterministic, distinct per batch row/tile).
    ku, kn = jax.random.split(key)
    u = jax.random.uniform(ku, (k, N, F), dtype=jnp.float32)
    n = jax.random.normal(kn, (k, N, D), dtype=jnp.float32)

    # Advisory cost estimate: 2 matmuls/step, sigmoid transcendentals.
    cost = pl.CostEstimate(
        flops=4 * k * N * F * D,
        transcendentals=k * N * F,
        bytes_accessed=4 * (3 * N * D + k * N * (F + D) + F + D) + 2 * F * D,
    )

    # Scoped-VMEM sizing: resident bf16 weights + double-buffered tiles.
    tile_bytes = (
        2 * (F * D * 2)                      # W (bf16), buffered
        + 2 * (F + D) * 4                    # biases
        + 2 * tile_n * D * 4                 # x tile
        + 2 * k * tile_n * (F + D) * 4       # u / n tiles
        + 2 * 2 * tile_n * D * 4             # two output tiles
        + 4 * tile_n * (F + D) * 4           # intermediates headroom
    )
    vmem_limit = int(min(max(2 * tile_bytes, 32 * 1024 * 1024), 64 * 1024 * 1024))

    kernel = functools.partial(rbm_kernel, k=k)
    x_k, mean = pl.pallas_call(
        kernel,
        out_shape=(
            jax.ShapeDtypeStruct((N, D), jnp.float32),
            jax.ShapeDtypeStruct((N, D), jnp.float32),
        ),
        grid=grid,
        in_specs=[
            pl.BlockSpec((tile_n, D), lambda i: (i, 0)),        # x  (tiled)
            pl.BlockSpec((F, D), lambda i: (0, 0)),             # W  (resident)
            pl.BlockSpec((1, F), lambda i: (0, 0)),             # b  (resident)
            pl.BlockSpec((1, D), lambda i: (0, 0)),             # c  (resident)
            pl.BlockSpec((k, tile_n, F), lambda i: (0, i, 0)),  # uniforms
            pl.BlockSpec((k, tile_n, D), lambda i: (0, i, 0)),  # normals
        ],
        out_specs=(
            pl.BlockSpec((tile_n, D), lambda i: (i, 0)),
            pl.BlockSpec((tile_n, D), lambda i: (i, 0)),
        ),
        compiler_params=pltpu.CompilerParams(
            dimension_semantics=("parallel",),
            vmem_limit_bytes=vmem_limit,
        ),
        cost_estimate=cost,
    )(
        x.astype(jnp.float32),
        W.astype(jnp.bfloat16),
        b.reshape(1, F).astype(jnp.float32),
        c.reshape(1, D).astype(jnp.float32),
        u,
        n,
    )
    return x_k, mean, u, n


def rbm_reference(x, W, b, c, u, n, k):
    """Pure-JAX reference (same bf16 weight rounding) for sanity checking."""
    Wb = W.astype(jnp.bfloat16)
    x_k = x.astype(jnp.float32)
    mean = jnp.zeros_like(x_k)
    for step in range(k):
        act = jnp.dot(x_k.astype(jnp.bfloat16), Wb.T,
                      preferred_element_type=jnp.float32) + b
        p = jax.nn.sigmoid(act)
        h = (u[step] < p).astype(jnp.bfloat16)
        mean = jnp.dot(h, Wb, preferred_element_type=jnp.float32) + c
        x_k = mean + n[step]
    return x_k, mean


if __name__ == "__main__":
    # Small but lane/sublane-aligned demo shapes (RBM(D, F, k), batch N).
    N, D, F, K = 256, 256, 128, 2

    key = jax.random.PRNGKey(0)
    k_w, k_x, k_s = jax.random.split(key, 3)

    # Parameter init mirrors the PyTorch module: W ~ 0.01*randn, biases zero.
    W = 0.01 * jax.random.normal(k_w, (F, D), dtype=jnp.float32)
    b = jnp.zeros((F,), dtype=jnp.float32)
    c = jnp.zeros((D,), dtype=jnp.float32)

    # Binary-ish visible input (typical RBM usage).
    x = (jax.random.uniform(k_x, (N, D)) < 0.5).astype(jnp.float32)

    x_k, x_mean, u, n = rbm_forward(x, W, b, c, k=K, key=k_s)
    jax.block_until_ready((x_k, x_mean))

    assert x_k.shape == (N, D) and x_mean.shape == (N, D)
    assert bool(jnp.all(jnp.isfinite(x_k))) and bool(jnp.all(jnp.isfinite(x_mean)))

    # Loose sanity check against a pure-JAX reference using the same randoms
    # (tolerance is generous: a Bernoulli flip at the f32-accumulation noise
    # floor perturbs a few elements by up to ~max|W|).
    ref_xk, ref_mean = rbm_reference(x, W, b, c, u, n, K)
    assert bool(jnp.allclose(x_k, ref_xk, atol=0.2)), "x_k mismatch vs reference"
    assert bool(jnp.allclose(x_mean, ref_mean, atol=0.2)), "mean mismatch vs reference"

    print("KERNEL_OK")
</pallas_src>

<mosaic_0001>
module attributes {stable_mosaic.version = 11 : i64} {
  func.func @rbm_kernel(%arg0: i32, %arg1: memref<128x256xf32, #tpu.memory_space<vmem>>, %arg2: memref<128x256xbf16, #tpu.memory_space<vmem>>, %arg3: memref<1x128xf32, #tpu.memory_space<vmem>>, %arg4: memref<1x256xf32, #tpu.memory_space<vmem>>, %arg5: memref<2x128x128xf32, #tpu.memory_space<vmem>>, %arg6: memref<2x128x256xf32, #tpu.memory_space<vmem>>, %arg7: memref<128x256xf32, #tpu.memory_space<vmem>>, %arg8: memref<128x256xf32, #tpu.memory_space<vmem>>) attributes {dimension_semantics = [#tpu.dimension_semantics<parallel>], iteration_bounds = array<i64: 2>, scalar_prefetch = 0 : i64, scratch_operands = 0 : i64, tpu.core_type = #tpu.core_type<tc>, window_params = [{transform_indices = @transform_0, window_bounds = array<i64: 128, 256>}, {pipeline_mode = #tpu.pipeline_mode<synchronous>, transform_indices = @transform_1, window_bounds = array<i64: 128, 256>}, {pipeline_mode = #tpu.pipeline_mode<synchronous>, transform_indices = @transform_2, window_bounds = array<i64: 1, 128>}, {pipeline_mode = #tpu.pipeline_mode<synchronous>, transform_indices = @transform_3, window_bounds = array<i64: 1, 256>}, {transform_indices = @transform_4, window_bounds = array<i64: 2, 128, 128>}, {transform_indices = @transform_5, window_bounds = array<i64: 2, 128, 256>}, {transform_indices = @transform_6, window_bounds = array<i64: 128, 256>}, {transform_indices = @transform_7, window_bounds = array<i64: 128, 256>}]} {
    %c0 = arith.constant 0 : index
    %c0_0 = arith.constant 0 : index
    %0 = vector.load %arg2[%c0, %c0_0] : memref<128x256xbf16, #tpu.memory_space<vmem>>, vector<128x256xbf16>
    %c0_1 = arith.constant 0 : index
    %c0_2 = arith.constant 0 : index
    %1 = vector.load %arg3[%c0_1, %c0_2] : memref<1x128xf32, #tpu.memory_space<vmem>>, vector<1x128xf32>
    %2 = vector.shape_cast %1 : vector<1x128xf32> to vector<1x128xf32>
    %3 = vector.broadcast %2 : vector<1x128xf32> to vector<128x128xf32>
    %c0_3 = arith.constant 0 : index
    %c0_4 = arith.constant 0 : index
    %4 = vector.load %arg4[%c0_3, %c0_4] : memref<1x256xf32, #tpu.memory_space<vmem>>, vector<1x256xf32>
    %5 = vector.shape_cast %4 : vector<1x256xf32> to vector<1x256xf32>
    %6 = vector.broadcast %5 : vector<1x256xf32> to vector<128x256xf32>
    %c0_5 = arith.constant 0 : index
    %c0_6 = arith.constant 0 : index
    %7 = vector.load %arg1[%c0_5, %c0_6] : memref<128x256xf32, #tpu.memory_space<vmem>>, vector<128x256xf32>
    %8 = arith.truncf %7 : vector<128x256xf32> to vector<128x256xbf16>
    %cst = arith.constant dense<0.000000e+00> : vector<128x128xf32>
    %9 = tpu.matmul %8, %0, %cst {dimension_numbers = #tpu.dot_dimension_numbers<[1], [1], [0], [0], [0, 0, 1, 0], [], []>} : vector<128x256xbf16>, vector<128x256xbf16>, vector<128x128xf32> -> vector<128x128xf32>
    %10 = arith.addf %9, %3 : vector<128x128xf32>
    %11 = arith.negf %10 : vector<128x128xf32>
    %12 = math.exp %11 : vector<128x128xf32>
    %cst_7 = arith.constant 1.000000e+00 : f32
    %13 = vector.broadcast %cst_7 : f32 to vector<128x128xf32>
    %14 = arith.addf %13, %12 : vector<128x128xf32>
    %15 = arith.divf %13, %14 : vector<128x128xf32>
    %c0_8 = arith.constant 0 : index
    %c0_9 = arith.constant 0 : index
    %c0_10 = arith.constant 0 : index
    %16 = vector.load %arg5[%c0_8, %c0_9, %c0_10] : memref<2x128x128xf32, #tpu.memory_space<vmem>>, vector<1x128x128xf32>
    %17 = vector.shape_cast %16 : vector<1x128x128xf32> to vector<128x128xf32>
    %18 = arith.cmpf olt, %17, %15 : vector<128x128xf32>
    %19 = arith.extui %18 : vector<128x128xi1> to vector<128x128xi32>
    %20 = arith.sitofp %19 : vector<128x128xi32> to vector<128x128xf32>
    %21 = arith.truncf %20 : vector<128x128xf32> to vector<128x128xbf16>
    %cst_11 = arith.constant dense<0.000000e+00> : vector<128x256xf32>
    %22 = tpu.matmul %21, %0, %cst_11 {dimension_numbers = #tpu.dot_dimension_numbers<[1], [0], [0], [1], [0, 0, 1, 1], [], []>} : vector<128x128xbf16>, vector<128x256xbf16>, vector<128x256xf32> -> vector<128x256xf32>
    %23 = arith.addf %22, %6 : vector<128x256xf32>
    %c0_12 = arith.constant 0 : index
    %c0_13 = arith.constant 0 : index
    %c0_14 = arith.constant 0 : index
    %24 = vector.load %arg6[%c0_12, %c0_13, %c0_14] : memref<2x128x256xf32, #tpu.memory_space<vmem>>, vector<1x128x256xf32>
    %25 = vector.shape_cast %24 : vector<1x128x256xf32> to vector<128x256xf32>
    %26 = arith.addf %23, %25 : vector<128x256xf32>
    %27 = arith.truncf %26 : vector<128x256xf32> to vector<128x256xbf16>
    %cst_15 = arith.constant dense<0.000000e+00> : vector<128x128xf32>
    %28 = tpu.matmul %27, %0, %cst_15 {dimension_numbers = #tpu.dot_dimension_numbers<[1], [1], [0], [0], [0, 0, 1, 0], [], []>} : vector<128x256xbf16>, vector<128x256xbf16>, vector<128x128xf32> -> vector<128x128xf32>
    %29 = arith.addf %28, %3 : vector<128x128xf32>
    %30 = arith.negf %29 : vector<128x128xf32>
    %31 = math.exp %30 : vector<128x128xf32>
    %cst_16 = arith.constant 1.000000e+00 : f32
    %32 = vector.broadcast %cst_16 : f32 to vector<128x128xf32>
    %33 = arith.addf %32, %31 : vector<128x128xf32>
    %34 = arith.divf %32, %33 : vector<128x128xf32>
    %c1 = arith.constant 1 : index
    %c0_17 = arith.constant 0 : index
    %c0_18 = arith.constant 0 : index
    %35 = vector.load %arg5[%c1, %c0_17, %c0_18] : memref<2x128x128xf32, #tpu.memory_space<vmem>>, vector<1x128x128xf32>
    %36 = vector.shape_cast %35 : vector<1x128x128xf32> to vector<128x128xf32>
    %37 = arith.cmpf olt, %36, %34 : vector<128x128xf32>
    %38 = arith.extui %37 : vector<128x128xi1> to vector<128x128xi32>
    %39 = arith.sitofp %38 : vector<128x128xi32> to vector<128x128xf32>
    %40 = arith.truncf %39 : vector<128x128xf32> to vector<128x128xbf16>
    %cst_19 = arith.constant dense<0.000000e+00> : vector<128x256xf32>
    %41 = tpu.matmul %40, %0, %cst_19 {dimension_numbers = #tpu.dot_dimension_numbers<[1], [0], [0], [1], [0, 0, 1, 1], [], []>} : vector<128x128xbf16>, vector<128x256xbf16>, vector<128x256xf32> -> vector<128x256xf32>
    %42 = arith.addf %41, %6 : vector<128x256xf32>
    %c1_20 = arith.constant 1 : index
    %c0_21 = arith.constant 0 : index
    %c0_22 = arith.constant 0 : index
    %43 = vector.load %arg6[%c1_20, %c0_21, %c0_22] : memref<2x128x256xf32, #tpu.memory_space<vmem>>, vector<1x128x256xf32>
    %44 = vector.shape_cast %43 : vector<1x128x256xf32> to vector<128x256xf32>
    %45 = arith.addf %42, %44 : vector<128x256xf32>
    %c0_23 = arith.constant 0 : index
    %c0_24 = arith.constant 0 : index
    %46 = vector.load %arg7[%c0_23, %c0_24] : memref<128x256xf32, #tpu.memory_space<vmem>>, vector<128x256xf32>
    tpu.vector_store %arg7[%c0_23, %c0_24], %45 {strides = array<i32>} : memref<128x256xf32, #tpu.memory_space<vmem>>, vector<128x256xf32>,
    %c0_25 = arith.constant 0 : index
    %c0_26 = arith.constant 0 : index
    %47 = vector.load %arg8[%c0_25, %c0_26] : memref<128x256xf32, #tpu.memory_space<vmem>>, vector<128x256xf32>
    tpu.vector_store %arg8[%c0_25, %c0_26], %42 {strides = array<i32>} : memref<128x256xf32, #tpu.memory_space<vmem>>, vector<128x256xf32>,
    return
  }
  func.func @transform_0(%arg0: i32) -> (i32, i32) {
    %c0_i32 = arith.constant 0 : i32
    %c0_i32_0 = arith.constant 0 : i32
    return %arg0, %c0_i32 : i32, i32
  }
  func.func @transform_1(%arg0: i32) -> (i32, i32) {
    %c0_i32 = arith.constant 0 : i32
    %c0_i32_0 = arith.constant 0 : i32
    %c0_i32_1 = arith.constant 0 : i32
    return %c0_i32, %c0_i32_0 : i32, i32
  }
  func.func @transform_2(%arg0: i32) -> (i32, i32) {
    %c0_i32 = arith.constant 0 : i32
    %c0_i32_0 = arith.constant 0 : i32
    %c0_i32_1 = arith.constant 0 : i32
    return %c0_i32, %c0_i32_0 : i32, i32
  }
  func.func @transform_3(%arg0: i32) -> (i32, i32) {
    %c0_i32 = arith.constant 0 : i32
    %c0_i32_0 = arith.constant 0 : i32
    %c0_i32_1 = arith.constant 0 : i32
    return %c0_i32, %c0_i32_0 : i32, i32
  }
  func.func @transform_4(%arg0: i32) -> (i32, i32, i32) {
    %c0_i32 = arith.constant 0 : i32
    %c0_i32_0 = arith.constant 0 : i32
    %c0_i32_1 = arith.constant 0 : i32
    return %c0_i32, %arg0, %c0_i32_0 : i32, i32, i32
  }
  func.func @transform_5(%arg0: i32) -> (i32, i32, i32) {
    %c0_i32 = arith.constant 0 : i32
    %c0_i32_0 = arith.constant 0 : i32
    %c0_i32_1 = arith.constant 0 : i32
    return %c0_i32, %arg0, %c0_i32_0 : i32, i32, i32
  }
  func.func @transform_6(%arg0: i32) -> (i32, i32) {
    %c0_i32 = arith.constant 0 : i32
    %c0_i32_0 = arith.constant 0 : i32
    return %arg0, %c0_i32 : i32, i32
  }
  func.func @transform_7(%arg0: i32) -> (i32, i32) {
    %c0_i32 = arith.constant 0 : i32
    %c0_i32_0 = arith.constant 0 : i32
    return %arg0, %c0_i32 : i32, i32
  }
}

</mosaic_0001>

<bundles_post_ra>
// kernel: tpu_custom_call.1
= control target key start
LH: loop header
LB: loop body
LE: loop exit
PB: predicated region body
PF: predicated region fallthrough
CT: control target
= control target key end

     0   :  { %s3218_s0 = inlined_call_operand.hbm [shape: f32[256,256], index: 0, kind: input, shape index: {}]   ;;  %s3219_s1 = inlined_call_operand.hbm [shape: bf16[128,256], index: 1, kind: input, shape index: {}]   ;;  %s3220_s2 = inlined_call_operand.vmem [shape: f32[1,128], index: 2, kind: input, shape index: {}]   ;;  %s3221_s3 = inlined_call_operand.vmem [shape: f32[1,256], index: 3, kind: input, shape index: {}]   ;;  %s3222_s4 = inlined_call_operand.hbm [shape: f32[2,256,128], index: 4, kind: input, shape index: {}]   ;;  %s3223_s5 = inlined_call_operand.hbm [shape: f32[2,256,256], index: 5, kind: input, shape index: {}]   ;;  %s3224_s6 = inlined_call_operand.hbm [shape: f32[256,256], index: 6, kind: output, shape index: {0}]   ;;  %s3225_s7 = inlined_call_operand.hbm [shape: f32[256,256], index: 7, kind: output, shape index: {1}]  }
   0x1   :  { %3233 = sst [smem:[#allocation24_spill]] %s3218_s0 }
   0x2   :  { %3234 = sst [smem:[#allocation25_spill]] %s3219_s1 }
   0x3   :  { %13 = vsyncpa [#allocation3], 0 }
   0x4   :  { %15 = vsyncpa [#allocation3 + $0x1], 0 }
   0x5   :  { %16 = vsyncpa [#allocation6], 0 }
   0x6   :  { %17 = vsyncpa [#allocation4], 0 }
   0x7   :  { %19 = vsyncpa [#allocation4 + $0x1], 0 }
   0x8   :  { %20 = vsyncpa [#allocation11], 0 }
   0x9   :  { %22 = vsyncpa [#allocation11 + $0x1], 0  ;;  %s2472_s24 = smov 0   ;;  %s2474_s25 = smov 0  }
   0xa   :  { %s2476_s26 = smov 0   ;;  %s2478_s27 = smov 0  }
   0xb LB: > { %s2493_s28 = sadd.s32 4294967295, %s2407_s27   ;;  %s1776_s29 = sadd.s32 4294967294, %s2407_s27   ;;  %s2407_s27 = sphi %s2478_s27, %s3257_s27   ;;  %s2403_s26 = sphi %s2476_s26, %s3256_s26   ;;  %s2399_s25 = sphi %s2474_s25, %s3255_s25   ;;  %s2395_s24 = sphi %s2472_s24, %s3254_s24  }
   0xc   : > { %s2497_s30 = sadd.s32 1, %s2407_s27   ;;  %s35_s8 = sadd.s32 1, %s2403_s26 }
   0xd   : > { %s32_s9 = ssub.s32 %s2407_s27, %s2497_s30  ;;  %p42_p0 = scmp.ne.s32.totalorder %s2403_s26, %s2399_s25 }
   0xe   : > { %p33_p1 = scmp.eq.s32.totalorder %s32_s9, 0  ;;  %p43_p2 = scmp.eq.s32.totalorder %s2407_s27, 0 }
   0xf   : > { %p48_p3 = scmp.ne.s32.totalorder %s2399_s25, %s2395_s24  ;;  %p3226_p4 = scmp.eq.s32.totalorder %s2493_s28, 0 }
  0x10   : > { %s2509_s10 = scalar_select %p33_p1, %s2403_s26, %s35_s8  }
  0x11   : > { %p2511_p5 = por %p43_p2, %p42_p0  ;;  %p2517_p6 = por %p3226_p4, %p48_p3 }
  0x12   : > { %3235 = sst [smem:[#allocation23_spill]] %s2509_s10  ;;  %p187_p7 = scmp.eq.s32.totalorder %s2493_s28, 1 }
  0x13   : > { %s3236_s11 = scalar_select %p2511_p5, 1, 0 }
  0x14   : > { %s3237_s12 = scalar_select %p2517_p6, 1, 0 }
  0x15   : > { %p193_p8 = scmp.eq.s32.totalorder %s1776_s29, 1  ;;  %p1777_p9 = scmp.ge.s32.totalorder %s2407_s27, 1 }
  0x16   : > { %p226_p10 = scmp.lt.s32.totalorder %s2407_s27, 3  ;;  %p2524_p11 = por %p187_p7, %p42_p0 }
  0x17   : > { %p2528_p12 = por %p193_p8, %p48_p3  ;;  %s2409_s16 = smov [#allocation5]  }
  0x18   : > { %s3238_s13 = scalar_select %p2524_p11, 1, 0 }
  0x19   : > { %s3239_s14 = scalar_select %p2528_p12, 1, 0 }
  0x1a   : > { %p2532_p13 = pnand %p1777_p9, %p226_p10  ;;  %s238_s17 = sshll.u32 %s2409_s16, 4  ;;  %s239_s17 = int_to_ptr.vmem [resolvable:$true] %s238_s17 }
  0x1b   : > { %s3242_s1 = sld [smem:[#allocation25_spill]] }
  0x1c   : > { %s3240_s15 = scalar_select %p2532_p13, 1, 0 }
  0x1d   : > { %p2026_p1 = pneg %p2532_p13 }
  0x1f   : > { %p2540_p2 = pnand %p2026_p1, %p3226_p4 }
  0x21   : > { %s2245_s21 = scalar_lea.hbm %s3242_s1, 2048  ;;  %p2247_p3 = pneg %p2540_p2 }
  0x22   : > { %p2246_p0 = scmp.ne.s32.totalorder %s3242_s1, %s2245_s21  ;;  %p2252_p9 = scmp.lt.u32.totalorder %s2245_s21, %s3242_s1 }
  0x24   : > { %p2248_p7 = pnand %p2247_p3, %p2246_p0 }
  0x26   : > { %p2249_p8 = pneg %p2248_p7 }
  0x28   : > { %p2254_p10 = pnand %p2252_p9, %p2249_p8 }
  0x2a   : > { %2257 = shalt.err (!%p2254_p10)
}
  0x2b   : > { %s2258_s9 = scalar_lea.vmem %s239_s17, 2048  ;;  %p2266_p11 = scmp.lt.s32.totalorder %s239_s17, %s239_s17 }
  0x2c   : > { %p2259_p1 = scmp.ne.s32.totalorder %s239_s17, %s2258_s9  ;;  %p2267_p6 = scmp.lt.s32.totalorder %s2258_s9, %s2258_s9 }
  0x2e   : > { %p2261_p4 = pnand %p2259_p1, %p2247_p3  ;;  %p2268_p13 = por %p2267_p6, %p2266_p11 }
  0x30   : > { %p2262_p12 = pneg %p2261_p4 }
  0x32   : > { %p2269_p5 = pnand %p2268_p13, %p2262_p12 }
  0x34   : > { %2272 = shalt.err (!%p2269_p5)
}
  0x35   : > { %s2410_s16 = smov 128   ;;  %s2411_s19 = smov 8  }
  0x36   : > { %2029 = dma.hbm_to_vmem [thread:$0]  (!%p2540_p2), %s3242_s1, 2048, %s239_s17, [#allocation6], %s2410_s16, %s2410_s16, %s2411_s19  }
  0x37   : > { %p1779_p0 = scmp.ge.s32.totalorder %s2407_s27, 2 }
  0x38   : > { %s258_s21 = sand.u32 (!%p1779_p0), 1, %s2407_s27   ;;  %s3231_s23 = sand.u32 (!%p1779_p0), 1, %s2403_s26  }
  0x39   : > { %254 = sbr.rel (%p1779_p0) target bundleno = 113 (0x71), region = 28  ;;  %s2567_s29 = sshll.u32 (!%p1779_p0), %s3231_s23, 8 }
  0x3a   : > { %s3232_s18 = sshll.u32 (!%p1779_p0), %s2407_s27, 12  ;;  %s3243_s0 = sld [smem:[#allocation24_spill]] (!%p1779_p0) }
  0x3b   : > { %s262_s16 = scalar_lea.vmem (!%p1779_p0), [#allocation2], %s2567_s29  ;;  %s2580_s20 = scalar_lea.sflag (!%p1779_p0), [#allocation3], %s258_s21 }
  0x3c   : > { %s270_s19 = sshll.u32 (!%p1779_p0), %s262_s16, 4  ;;  %p3244_p5 = scmp.ne.s32.totalorder (!%p1779_p0), %s3236_s11, 0  ;;  %s2578_s19 = int_to_ptr.vmem [resolvable:$true] %s270_s19 }
  0x40   : > { %s2575_s9 = scalar_lea.hbm %s3243_s0, %s3232_s18  ;;  %s2277_s17 = scalar_lea.hbm %s3243_s0, 8192 }
  0x41   : > { %s2273_s22 = scalar_lea.hbm %s2575_s9, 4096  ;;  %p2278_p12 = scmp.lt.u32.totalorder %s2575_s9, %s3243_s0 }
  0x42   : > { %p2274_p4 = scmp.ne.s32.totalorder %s2575_s9, %s2273_s22  ;;  %p2279_p13 = scmp.lt.u32.totalorder %s2277_s17, %s2273_s22 }
  0x43   : > { %p2281_p3 = scmp.lt.u32.totalorder %s2273_s22, %s2575_s9 }
  0x44   : > { %p2275_p6 = pnand %p2274_p4, %p3244_p5  ;;  %p2280_p2 = por %p2279_p13, %p2278_p12 }
  0x46   : > { %p2276_p11 = pneg %p2275_p6  ;;  %p2282_p7 = por %p2281_p3, %p2280_p2 }
  0x48   : > { %p2283_p8 = pnand %p2282_p7, %p2276_p11 }
  0x4a   : > { %2286 = shalt.err (!%p2283_p8)
}
  0x4b   : > { %s2287_s21 = scalar_lea.vmem %s2578_s19, 4096  ;;  %s2412_s1 = smov [#allocation2]  }
  0x4c   : > { %p2288_p9 = scmp.ne.s32.totalorder %s2578_s19, %s2287_s21  ;;  %s2291_s23 = sshll.u32 %s2412_s1, 4  ;;  %s2292_s23 = int_to_ptr.vmem [resolvable:$false] %s2291_s23 }
  0x4d   : > { %s2293_s18 = scalar_lea.vmem %s2292_s23, 8192  ;;  %p2294_p4 = scmp.lt.s32.totalorder %s2578_s19, %s2292_s23 }
  0x4e   : > { %p2289_p10 = pnand %p2288_p9, %p3244_p5  ;;  %p2295_p6 = scmp.lt.s32.totalorder %s2293_s18, %s2287_s21 }
  0x50   : > { %p2290_p1 = pneg %p2289_p10  ;;  %p2296_p12 = por %p2295_p6, %p2294_p4 }
  0x52   : > { %p2297_p13 = pnand %p2296_p12, %p2290_p1 }
  0x54   : > { %2300 = shalt.err (!%p2297_p13)
}
  0x55   : > { %s2413_s16 = smov 256   ;;  %s2414_s22 = smov 16  }
  0x56   : > { %2000 = dma.hbm_to_vmem [thread:$0]  (%p3244_p5), %s2575_s9, 4096, %s2578_s19, %s2580_s20, %s2413_s16, %s2413_s16, %s2414_s22  }
  0x57   : > { %s1975_s17 = sshll.u32 %s2407_s27, 11  ;;  %s284_s18 = scalar_lea.vmem [#allocation7], %s2567_s29 }
  0x58   : > { %s290_s1 = scalar_lea.hbm %s3222_s4, %s1975_s17  ;;  %s303_s0 = sshll.u32 %s284_s18, 4  ;;  %s304_s0 = int_to_ptr.vmem [resolvable:$true] %s303_s0 }
  0x59   : > { %s2001_s23 = scalar_select %p3244_p5, [#allocation0], [#allocation16] }
  0x5a   : > { %s2415_s9 = smov 4096   ;;  %s2416_s19 = smov 2048  }
  0x5b   : > { %s295_s10 = sld [smem:[%s2001_s23]]   ;;  %s2417_s16 = smov 16  }
  0x5c   : > { %2002 = sst [smem:[#allocation13]] (%p3244_p5), %s2415_s9  ;;  %s2418_s22 = smov 128  }
  0x5d   : > { %2003 = sst [smem:[#allocation13 + $0x1]] (%p3244_p5), %s2416_s19  ;;  %s2419_s17 = smov 8  }
  0x5e   : > { %2004 = sst [smem:[#allocation13 + $0x2]] (%p3244_p5), %s2417_s16  ;;  %s2420_s21 = smov [#allocation12]  }
  0x5f   : > { %2005 = sst [smem:[#allocation13 + $0x3]] (%p3244_p5), %s2418_s22 }
  0x60   : > { %2006 = sst [smem:[#allocation13 + $0x4]] (%p3244_p5), %s2418_s22 }
  0x61   : > { %s1787_s29 = sshll.u32 %s295_s10, 26  ;;  %2007 = sst [smem:[#allocation13 + $0x5]] (%p3244_p5), %s2419_s17 }
  0x62   : > { %s1788_s8 = sadd.s32 134217728, %s1787_s29 }
  0x63   : > { %2008 = dma.general (%p3244_p5), %s290_s1, 4096, %s304_s0, %s2580_s20, %s2420_s21, [#allocation13], %s1788_s8, 0  }
  0x64   : > { %s3245_s23 = sand.u32 1, %s2403_s26   ;;  %s2421_s10 = smov 8192  }
  0x65   : > { %s1789_s18 = sshll.u32 %s3245_s23, 9  ;;  %2010 = sst [smem:[#allocation15]] (%p3244_p5), %s2421_s10 }
  0x66   : > { %s2009_s9 = scalar_select %p3244_p5, [#allocation0], [#allocation17] }
  0x67   : > { %s330_s0 = scalar_lea.vmem [#allocation8], %s1789_s18  ;;  %s2422_s16 = smov 4096  }
  0x68   : > { %s342_s19 = sld [smem:[%s2009_s9]]   ;;  %s350_s1 = sshll.u32 %s330_s0, 4  ;;  %s351_s1 = int_to_ptr.vmem [resolvable:$true] %s350_s1 }
  0x69   : > { %2011 = sst [smem:[#allocation15 + $0x1]] (%p3244_p5), %s2422_s16  ;;  %s3246_s22 = sshll.u32 %s2407_s27, 12 }
  0x6a   : > { %s337_s8 = scalar_lea.hbm %s3223_s5, %s3246_s22  ;;  %s2423_s21 = smov 16  }
  0x6b   : > { %2012 = sst [smem:[#allocation15 + $0x2]] (%p3244_p5), %s2423_s21  ;;  %s2424_s23 = smov 256  }
  0x6c   : > { %2013 = sst [smem:[#allocation15 + $0x3]] (%p3244_p5), %s2424_s23  ;;  %s2425_s10 = smov [#allocation14]  }
  0x6d   : > { %2014 = sst [smem:[#allocation15 + $0x4]] (%p3244_p5), %s2424_s23 }
  0x6e   : > { %s1793_s9 = sshll.u32 %s342_s19, 26  ;;  %2015 = sst [smem:[#allocation15 + $0x5]] (%p3244_p5), %s2423_s21 }
  0x6f   : > { %s1794_s18 = sadd.s32 134217728, %s1793_s9 }
  0x70   : > { %2016 = dma.general (%p3244_p5), %s337_s8, 8192, %s351_s1, %s2580_s20, %s2425_s10, [#allocation15], %s1794_s18, 0  }
  0x71 PF: > { %p3247_p11 = scmp.ne.s32.totalorder %s3240_s15, 0 }
  0x72   : > { %s377_s0 = sand.u32 (!%p3247_p11), 1, %s2493_s28   ;;  %s2654_s16 = sand.u32 (!%p3247_p11), 1, %s2399_s25  }
  0x73   : > { %375 = sbr.rel (%p3247_p11) target bundleno = 1216 (0x4c0), region = 44  ;;  %s2657_s22 = sshll.u32 (!%p3247_p11), %s2654_s16, 8 }
  0x74   : > { %s378_s19 = scalar_lea.sflag (!%p3247_p11), [#allocation3], %s377_s0  ;;  %s2660_s29 = scalar_lea.vmem (!%p3247_p11), [#allocation2], %s2657_s22 }
  0x75   : > { %p3248_p2 = scmp.ne.s32.totalorder (!%p3247_p11), %s3237_s12, 0 }
  0x7a   : > { %2374 = dma.done.wait (%p3248_p2), %s378_s19, 4096  }
  0x7b   : > { %2376 = vsyncadd (%p3248_p2), %s378_s19, 4294963200  ;;  %p3249_p5 = scmp.eq.s32.totalorder %s2493_s28, 0 }
  0x7d   : > { %2378 = dma.done.wait (%p3249_p5), [#allocation6], 2048   ;;  %p3250_p3 = pmov %p3249_p5 }
  0x7e   : > { %s2671_s11 = scalar_lea.vmem [#allocation7], %s2657_s22 }
  0x7f   : > { %2380 = vsyncadd (%p3250_p3), [#allocation6], 4294965248 }
  0x80   : > { %2382 = dma.done.wait (%p3248_p2), %s378_s19, 12288  }
  0x81   : > { %2384 = vsyncadd (%p3248_p2), %s378_s19, 4294955008  ;;  %v2677_v0 = vld [vmem:[#allocation5 + $0x4] ss:$8 sps:$4 sm:$0xff]   ;;  %v2679_v1 = vld [vmem:[#allocation5] ss:$8 sps:$4 sm:$0xff]   ;;  %s1799_s17 = sshll.u32 %s2654_s16, 9 }
  0x82   : > { %618 = vmatprep.subr.bf16.mxu0 %v2677_v0  ;;  %v2682_v2 = vld [vmem:[#allocation5 + $0x14] ss:$8 sps:$4 sm:$0xff]   ;;  %883 = vmatprep.subr.bf16.mxu1 %v2677_v0  ;;  %v2689_v3 = vld [vmem:[#allocation5 + $0x10] ss:$8 sps:$4 sm:$0xff]   ;;  %v2691_v4 = vld [vmem:[#allocation5 + $0x24] ss:$8 sps:$4 sm:$0xff]  }
  0x83   : > { %619 = vmatpush1.bf16.xpose.msra.mxu0 %v2679_v1  ;;  %884 = vmatpush1.bf16.msra.mxu1 %v2679_v1  ;;  %v2695_v5 = vld [vmem:[#allocation5 + $0x20] ss:$8 sps:$4 sm:$0xff]   ;;  %v2697_v6 = vld [vmem:[#allocation5 + $0x34] ss:$8 sps:$4 sm:$0xff]   ;;  %v2705_v10 = vld [vmem:[#allocation5 + $0x30] ss:$8 sps:$4 sm:$0xff]  }
  0x84   : > { %620 = vmatprep.subr.bf16.mxu0 %v2682_v2  ;;  %885 = vmatprep.subr.bf16.mxu1 %v2682_v2  ;;  %v491_v7 = vld [vmem:[%s2660_s29 + $0x8] sm:$0xff]  ;;  %v493_v8 = vld [vmem:[%s2660_s29 + $0x18] sm:$0xff]  ;;  %v490_v19 = vld [vmem:[%s2660_s29] sm:$0xff]  ;;  %s2869_s8 = scalar_lea.vmem [#allocation8], %s1799_s17  ;;  %s3001_s9 = scalar_lea.vmem [#allocation10], %s2657_s22 }
  0x85   : > { %v523_v9 = vpack.c.bf16 %v493_v8, %v491_v7  ;;  %v2707_v11 = vld [vmem:[#allocation5 + $0x44] ss:$8 sps:$4 sm:$0xff]   ;;  %v2711_v12 = vld [vmem:[#allocation5 + $0x40] ss:$8 sps:$4 sm:$0xff]   ;;  %v2713_v13 = vld [vmem:[#allocation5 + $0x54] ss:$8 sps:$4 sm:$0xff]  }
  0x86   : > { %v2719_v14 = vld [vmem:[#allocation5 + $0x50] ss:$8 sps:$4 sm:$0xff]   ;;  %v2721_v15 = vld [vmem:[#allocation5 + $0x64] ss:$8 sps:$4 sm:$0xff]   ;;  %v2725_v16 = vld [vmem:[#allocation5 + $0x60] ss:$8 sps:$4 sm:$0xff]  }
  0x87   : > { %886 = vmatpush1.bf16.msra.mxu1 %v2689_v3  ;;  %650 = vmatprep.mubr.bf16.mxu0 %v523_v9  ;;  %v2727_v17 = vld [vmem:[#allocation5 + $0x74] ss:$8 sps:$4 sm:$0xff]   ;;  %v2733_v18 = vld [vmem:[#allocation5 + $0x70] ss:$8 sps:$4 sm:$0xff]   ;;  %v495_v21 = vld [vmem:[%s2660_s29 + $0x28] sm:$0xff]  ;;  %v2426_v7 = vmov 0  }
  0x88   : > { %887 = vmatprep.subr.bf16.mxu1 %v2691_v4  ;;  %v492_v20 = vld [vmem:[%s2660_s29 + $0x10] sm:$0xff]  ;;  %v497_v22 = vld [vmem:[%s2660_s29 + $0x38] sm:$0xff]  ;;  %v494_v25 = vld [vmem:[%s2660_s29 + $0x20] sm:$0xff]  ;;  %915 = vmatprep.mubr.bf16.mxu1 %v2426_v7  ;;  %s3009_s18 = scalar_lea.vmem [#allocation9], %s2657_s22  ;;  %s1979_s10 = sshll.u32 %s2493_s28, 12 }
  0x89   : > { %v522_v23 = vpack.c.bf16 %v492_v20, %v490_v19  ;;  %v525_v24 = vpack.c.bf16 %v497_v22, %v495_v21  ;;  %v496_v26 = vld [vmem:[%s2660_s29 + $0x30] sm:$0xff]  ;;  %v499_v27 = vld [vmem:[%s2660_s29 + $0x48] sm:$0xff]  ;;  %v501_v28 = vld [vmem:[%s2660_s29 + $0x58] sm:$0xff]  ;;  %s1621_s0 = sshll.u32 %s3001_s9, 4  ;;  %s1604_s22 = sshll.u32 %s3009_s18, 4  ;;  %s3131_s0 = int_to_ptr.vmem [resolvable:$true] %s1621_s0  ;;  %s3142_s22 = int_to_ptr.vmem [resolvable:$true] %s1604_s22 }
  0x8a   : > { %v524_v29 = vpack.c.bf16 %v496_v26, %v494_v25  ;;  %v527_v30 = vpack.c.bf16 %v501_v28, %v499_v27  ;;  %v498_v31 = vld [vmem:[%s2660_s29 + $0x40] sm:$0xff]  ;;  %v500_v32 = vld [vmem:[%s2660_s29 + $0x50] sm:$0xff]  ;;  %v503_v33 = vld [vmem:[%s2660_s29 + $0x68] sm:$0xff]  ;;  %s3140_s15 = scalar_lea.hbm %s3224_s6, %s1979_s10  ;;  %s1590_s20 = scalar_lea.sflag [#allocation11], %s2654_s16 }
  0x8b   : > { %621 = vmatpush1.bf16.xpose.msra.mxu0 %v2689_v3  ;;  %888 = vmatpush1.bf16.msra.mxu1 %v2695_v5  ;;  %v505_v34 = vld [vmem:[%s2660_s29 + $0x78] sm:$0xff]  ;;  %v526_v35 = vpack.c.bf16 %v500_v32, %v498_v31  ;;  %v502_v37 = vld [vmem:[%s2660_s29 + $0x60] sm:$0xff]  ;;  %v504_v38 = vld [vmem:[%s2660_s29 + $0x70] sm:$0xff]  ;;  %s2301_s1 = scalar_lea.vmem %s3131_s0, 4096  ;;  %p3251_p8 = scmp.ne.s32.totalorder %s3238_s13, 0 }
  0x8c   : > { %622 = vmatprep.subr.bf16.mxu0 %v2691_v4  ;;  %889 = vmatprep.subr.bf16.mxu1 %v2697_v6  ;;  %v529_v36 = vpack.c.bf16 %v505_v34, %v503_v33  ;;  %v507_v39 = vld [vmem:[%s2660_s29 + $0x88] sm:$0xff]  ;;  %v509_v40 = vld [vmem:[%s2660_s29 + $0x98] sm:$0xff]  ;;  %v528_v41 = vpack.c.bf16 %v504_v38, %v502_v37  ;;  %v506_v43 = vld [vmem:[%s2660_s29 + $0x80] sm:$0xff]  ;;  %p2302_p7 = scmp.ne.s32.totalorder %s3131_s0, %s2301_s1  ;;  %s2428_s17 = smov [#allocation10]  }
  0x8d   : > { %v531_v42 = vpack.c.bf16 %v509_v40, %v507_v39  ;;  %v508_v44 = vld [vmem:[%s2660_s29 + $0x90] sm:$0xff]  ;;  %v511_v45 = vld [vmem:[%s2660_s29 + $0xa8] sm:$0xff]  ;;  %v513_v46 = vld [vmem:[%s2660_s29 + $0xb8] sm:$0xff] }
  0x8e   : > { %v530_v47 = vpack.c.bf16 %v508_v44, %v506_v43  ;;  %v533_v48 = vpack.c.bf16 %v513_v46, %v511_v45  ;;  %v510_v49 = vld [vmem:[%s2660_s29 + $0xa0] sm:$0xff]  ;;  %v512_v50 = vld [vmem:[%s2660_s29 + $0xb0] sm:$0xff]  ;;  %v515_v51 = vld [vmem:[%s2660_s29 + $0xc8] sm:$0xff]  ;;  %p2303_p9 = pnand %p2302_p7, %p3251_p8 }
  0x8f   : > { %890 = vmatpush1.bf16.msra.mxu1 %v2705_v10  ;;  %v517_v52 = vld [vmem:[%s2660_s29 + $0xd8] sm:$0xff]  ;;  %v532_v53 = vpack.c.bf16 %v512_v50, %v510_v49  ;;  %v514_v55 = vld [vmem:[%s2660_s29 + $0xc0] sm:$0xff]  ;;  %v516_v56 = vld [vmem:[%s2660_s29 + $0xd0] sm:$0xff] }
  0x90   : > { %891 = vmatprep.subr.bf16.mxu1 %v2707_v11  ;;  %v535_v54 = vpack.c.bf16 %v517_v52, %v515_v51  ;;  %v519_v57 = vld [vmem:[%s2660_s29 + $0xe8] sm:$0xff]  ;;  %v521_v58 = vld [vmem:[%s2660_s29 + $0xf8] sm:$0xff]  ;;  %v534_v59 = vpack.c.bf16 %v516_v56, %v514_v55  ;;  %v518_v61 = vld [vmem:[%s2660_s29 + $0xe0] sm:$0xff]  ;;  %p2304_p10 = pneg %p2303_p9 }
  0x91   : > { %v537_v60 = vpack.c.bf16 %v521_v58, %v519_v57  ;;  %v520_v62 = vld [vmem:[%s2660_s29 + $0xf0] sm:$0xff]  ;;  %v2795_v8 = vld [vmem:[%s3220_s2] ss:$0 sm:$0xff]  ;;  %s3129_s29 = scalar_lea.hbm %s3225_s7, %s1979_s10 }
  0x92   : > { %v536_v63 = vpack.c.bf16 %v520_v62, %v518_v61  ;;  %v811_v58 = vld [vmem:[%s2671_s11] sm:$0xff] }
  0x93   : > { %623 = vmatpush1.bf16.xpose.msra.mxu0 %v2695_v5  ;;  %892 = vmatpush1.bf16.msra.mxu1 %v2711_v12 }
  0x94   : > { %624 = vmatprep.subr.bf16.mxu0 %v2697_v6  ;;  %893 = vmatprep.subr.bf16.mxu1 %v2713_v13 }
  0x97   : > { %894 = vmatpush1.bf16.msra.mxu1 %v2719_v14 }
  0x98   : > { %895 = vmatprep.subr.bf16.mxu1 %v2721_v15 }
  0x9b   : > { %625 = vmatpush1.bf16.xpose.msra.mxu0 %v2705_v10  ;;  %896 = vmatpush1.bf16.msra.mxu1 %v2725_v16 }
  0x9c   : > { %626 = vmatprep.subr.bf16.mxu0 %v2707_v11  ;;  %897 = vmatprep.subr.bf16.mxu1 %v2727_v17 }
  0x9f   : > { %898 = vmatpush1.bf16.msra.mxu1 %v2733_v18 }
  0xa0   : > { %1076 = vmatprep.subr.bf16.mxu1 %v2677_v0 }
  0xa3   : > { %627 = vmatpush1.bf16.xpose.msra.mxu0 %v2711_v12 }
  0xa4   : > { %628 = vmatprep.subr.bf16.mxu0 %v2713_v13 }
  0xab   : > { %629 = vmatpush1.bf16.xpose.msra.mxu0 %v2719_v14 }
  0xac   : > { %630 = vmatprep.subr.bf16.mxu0 %v2721_v15 }
  0xb3   : > { %631 = vmatpush1.bf16.xpose.msra.mxu0 %v2725_v16 }
  0xb4   : > { %632 = vmatprep.subr.bf16.mxu0 %v2727_v17 }
  0xbb   : > { %633 = vmatpush1.bf16.xpose.msra.mxu0 %v2733_v18 }
  0xbc   : > { %1342 = vmatprep.subr.bf16.mxu0 %v2677_v0 }
  0xc2   : > { %651 = vmatmul.mubr.bf16.vlgmr.msra.gmra.mrb[0].mxu0 %v522_v23 }
  0xc3   : > { %658 = vmatprep.mubr.bf16.mxu0 %v525_v24  ;;  %1343 = vmatpush1.bf16.msra.mxu0 %v2679_v1 }
  0xc4   : > { %1344 = vmatprep.subr.bf16.mxu0 %v2682_v2 }
  0xc7   : > { %1345 = vmatpush1.bf16.msra.mxu0 %v2689_v3 }
  0xc8   : > { %1346 = vmatprep.subr.bf16.mxu0 %v2691_v4 }
  0xca   : > { %659 = vmatmul.mubr.bf16.gmra.mrb[4].mxu0 %v524_v29 }
  0xcb   : > { %666 = vmatprep.mubr.bf16.mxu0 %v527_v30  ;;  %1347 = vmatpush1.bf16.msra.mxu0 %v2695_v5 }
  0xcc   : > { %1348 = vmatprep.subr.bf16.mxu0 %v2697_v6 }
  0xcf   : > { %1349 = vmatpush1.bf16.msra.mxu0 %v2705_v10 }
  0xd0   : > { %1350 = vmatprep.subr.bf16.mxu0 %v2707_v11 }
  0xd2   : > { %667 = vmatmul.mubr.bf16.gmra.mrb[8].mxu0 %v526_v35 }
  0xd3   : > { %674 = vmatprep.mubr.bf16.mxu0 %v529_v36  ;;  %1351 = vmatpush1.bf16.msra.mxu0 %v2711_v12 }
  0xd4   : > { %1352 = vmatprep.subr.bf16.mxu0 %v2713_v13 }
  0xd7   : > { %1353 = vmatpush1.bf16.msra.mxu0 %v2719_v14 }
  0xd8   : > { %1354 = vmatprep.subr.bf16.mxu0 %v2721_v15 }
  0xda   : > { %675 = vmatmul.mubr.bf16.gmra.mrb[12].mxu0 %v528_v41 }
  0xdb   : > { %682 = vmatprep.mubr.bf16.mxu0 %v531_v42  ;;  %1355 = vmatpush1.bf16.msra.mxu0 %v2725_v16 }
  0xdc   : > { %1356 = vmatprep.subr.bf16.mxu0 %v2727_v17 }
  0xdf   : > { %1357 = vmatpush1.bf16.msra.mxu0 %v2733_v18 }
  0xe2   : > { %683 = vmatmul.mubr.bf16.gmra.mrb[16].mxu0 %v530_v47 }
  0xe3   : > { %690 = vmatprep.mubr.bf16.mxu0 %v533_v48 }
  0xea   : > { %691 = vmatmul.mubr.bf16.gmra.mrb[20].mxu0 %v532_v53 }
  0xeb   : > { %698 = vmatprep.mubr.bf16.mxu0 %v535_v54 }
  0xf2   : > { %699 = vmatmul.mubr.bf16.gmra.mrb[24].mxu0 %v534_v59  ;;  %v812_v59 = vld [vmem:[%s2671_s11 + $0x8] sm:$0xff] }
  0xf3   : > { %706 = vmatprep.mubr.bf16.mxu0 %v537_v60 }
  0xfa   : > { %707 = vmatmul.mubr.bf16.gmra.mrb[28].mxu0 %v536_v63 }
  0xfb   : > { %1374 = vmatprep.mubr.bf16.mxu0 %v2426_v7 }
 0x195   : > { %v652_v9 = vpop.f32.mrb[0].mxu0 }
 0x196   : > { %v653_v19 = vadd.f32 %v2795_v8, %v652_v9  ;;  %v654_v20 = vpop.f32.mrb[1].mxu0 }
 0x197   : > { %v655_v21 = vpop.f32.mrb[2].mxu0 }
 0x198   : > { %v1819_v22 = vmul.f32 -1.442695, %v653_v19  ;;  %v656_v23 = vadd.f32 %v2795_v8, %v655_v21  ;;  %v657_v24 = vpop.f32.mrb[3].mxu0 }
 0x19a   : > { %2116 = vpow2.f32 %v1819_v22  ;;  %v1820_v25 = vmul.f32 -1.442695, %v656_v23  ;;  %v2427_v22 = vmov 1.0|1.0  }
 0x19c   : > { %2118 = vpow2.f32 %v1820_v25 }
 0x19d   : > { %v660_v26 = vpop.f32.mrb[4].mxu0 }
 0x19e   : > { %v661_v27 = vadd.f32 %v2795_v8, %v660_v26  ;;  %v662_v28 = vpop.f32.mrb[5].mxu0 }
 0x19f   : > { %v663_v29 = vpop.f32.mrb[6].mxu0 }
 0x1a0   : > { %v1821_v30 = vmul.f32 -1.442695, %v661_v27  ;;  %v664_v31 = vadd.f32 %v2795_v8, %v663_v29  ;;  %v665_v32 = vpop.f32.mrb[7].mxu0  ;;  %v813_v29 = vld [vmem:[%s2671_s11 + $0x10] sm:$0xff] }
 0x1a2   : > { %2120 = vpow2.f32 %v1821_v30  ;;  %v1822_v33 = vmul.f32 -1.442695, %v664_v31  ;;  %v814_v30 = vld [vmem:[%s2671_s11 + $0x18] sm:$0xff] }
 0x1a4   : > { %v2117_v34 = vpop.eup %2116  ;;  %2122 = vpow2.f32 %v1822_v33 }
 0x1a5   : > { %v763_v35 = vadd.f32 1.0, %v2117_v34  ;;  %v668_v36 = vpop.f32.mrb[8].mxu0 }
 0x1a6   : > { %v2119_v37 = vpop.eup %2118  ;;  %v669_v38 = vadd.f32 %v2795_v8, %v668_v36  ;;  %v670_v39 = vpop.f32.mrb[9].mxu0 }
 0x1a7   : > { %2124 = vrcp.f32 %v763_v35  ;;  %v764_v40 = vadd.f32 1.0, %v2119_v37  ;;  %v671_v41 = vpop.f32.mrb[10].mxu0 }
 0x1a8   : > { %v1823_v42 = vmul.f32 -1.442695, %v669_v38  ;;  %v672_v43 = vadd.f32 %v2795_v8, %v671_v41  ;;  %v673_v44 = vpop.f32.mrb[11].mxu0 }
 0x1a9   : > { %2126 = vrcp.f32 %v764_v40 }
 0x1aa   : > { %2128 = vpow2.f32 %v1823_v42  ;;  %v1824_v45 = vmul.f32 -1.442695, %v672_v43 }
 0x1ac   : > { %v2121_v46 = vpop.eup %2120  ;;  %2130 = vpow2.f32 %v1824_v45  ;;  %v815_v45 = vld [vmem:[%s2671_s11 + $0x20] sm:$0xff] }
 0x1ad   : > { %v765_v47 = vadd.f32 1.0, %v2121_v46  ;;  %v676_v48 = vpop.f32.mrb[12].mxu0  ;;  %v816_v46 = vld [vmem:[%s2671_s11 + $0x28] sm:$0xff] }
 0x1ae   : > { %v2123_v49 = vpop.eup %2122  ;;  %v677_v50 = vadd.f32 %v2795_v8, %v676_v48  ;;  %v678_v51 = vpop.f32.mrb[13].mxu0 }
 0x1af   : > { %2132 = vrcp.f32 %v765_v47  ;;  %v766_v52 = vadd.f32 1.0, %v2123_v49  ;;  %v679_v53 = vpop.f32.mrb[14].mxu0 }
 0x1b0   : > { %v1825_v54 = vmul.f32 -1.442695, %v677_v50  ;;  %v680_v55 = vadd.f32 %v2795_v8, %v679_v53  ;;  %v681_v56 = vpop.f32.mrb[15].mxu0 }
 0x1b1   : > { %v2125_v57 = vpop.eup %2124  ;;  %2134 = vrcp.f32 %v766_v52 }
 0x1b2   : > { %2136 = vpow2.f32 %v1825_v54  ;;  %v1826_v60 = vmul.f32 -1.442695, %v680_v55  ;;  %vm827_vm0 = vcmp.lt.f32.partialorder %v811_v58, %v2125_v57 }
 0x1b3   : > { %v2127_v61 = vpop.eup %2126 }
 0x1b4   : > { %v2129_v62 = vpop.eup %2128  ;;  %2138 = vpow2.f32 %v1826_v60  ;;  %vm828_vm1 = vcmp.lt.f32.partialorder %v812_v59, %v2127_v61  ;;  %v817_v61 = vld [vmem:[%s2671_s11 + $0x30] sm:$0xff] }
 0x1b5   : > { %v767_v63 = vadd.f32 1.0, %v2129_v62  ;;  %v684_v9 = vpop.f32.mrb[16].mxu0  ;;  %vm1851_vm2 = vmpackc.low %vm828_vm1, %vm827_vm0  ;;  %v818_v62 = vld [vmem:[%s2671_s11 + $0x38] sm:$0xff] }
 0x1b6   : > { %v2131_v19 = vpop.eup %2130  ;;  %v685_v20 = vadd.f32 %v2795_v8, %v684_v9  ;;  %v686_v21 = vpop.f32.mrb[17].mxu0  ;;  %1852 = vmatmul.mubr.msk.bf16.vlgmr.msra.gmra.mrb[0].mxu1 %vm1851_vm2, %v2427_v22 }
 0x1b7   : > { %2140 = vrcp.f32 %v767_v63  ;;  %v768_v23 = vadd.f32 1.0, %v2131_v19  ;;  %v687_v24 = vpop.f32.mrb[18].mxu0  ;;  %925 = vmatprep.mubr.bf16.mxu1 %v2426_v7  ;;  %1077 = vmatpush1.bf16.xpose.msra.mxu1 %v2679_v1 }
 0x1b8   : > { %v1827_v25 = vmul.f32 -1.442695, %v685_v20  ;;  %v688_v26 = vadd.f32 %v2795_v8, %v687_v24  ;;  %v689_v27 = vpop.f32.mrb[19].mxu0  ;;  %1078 = vmatprep.subr.bf16.mxu1 %v2682_v2 }
 0x1b9   : > { %v2133_v28 = vpop.eup %2132  ;;  %2142 = vrcp.f32 %v768_v23 }
 0x1ba   : > { %2144 = vpow2.f32 %v1827_v25  ;;  %v1828_v31 = vmul.f32 -1.442695, %v688_v26  ;;  %vm829_vm3 = vcmp.lt.f32.partialorder %v813_v29, %v2133_v28 }
 0x1bb   : > { %v2135_v32 = vpop.eup %2134 }
 0x1bc   : > { %v2137_v33 = vpop.eup %2136  ;;  %2146 = vpow2.f32 %v1828_v31  ;;  %vm830_vm4 = vcmp.lt.f32.partialorder %v814_v30, %v2135_v32  ;;  %v819_v32 = vld [vmem:[%s2671_s11 + $0x40] sm:$0xff] }
 0x1bd   : > { %v769_v34 = vadd.f32 1.0, %v2137_v33  ;;  %v692_v35 = vpop.f32.mrb[20].mxu0  ;;  %vm1853_vm5 = vmpackc.low %vm830_vm4, %vm829_vm3  ;;  %v820_v33 = vld [vmem:[%s2671_s11 + $0x48] sm:$0xff] }
 0x1be   : > { %v2139_v36 = vpop.eup %2138  ;;  %v693_v37 = vadd.f32 %v2795_v8, %v692_v35  ;;  %v694_v38 = vpop.f32.mrb[21].mxu0  ;;  %1854 = vmatmul.mubr.msk.bf16.gmra.mrb[4].mxu1 %vm1853_vm5, %v2427_v22 }
 0x1bf   : > { %2148 = vrcp.f32 %v769_v34  ;;  %v770_v39 = vadd.f32 1.0, %v2139_v36  ;;  %v695_v40 = vpop.f32.mrb[22].mxu0  ;;  %935 = vmatprep.mubr.bf16.mxu1 %v2426_v7  ;;  %1079 = vmatpush1.bf16.xpose.msra.mxu1 %v2689_v3 }
 0x1c0   : > { %v1829_v41 = vmul.f32 -1.442695, %v693_v37  ;;  %v696_v42 = vadd.f32 %v2795_v8, %v695_v40  ;;  %v697_v43 = vpop.f32.mrb[23].mxu0  ;;  %1080 = vmatprep.subr.bf16.mxu1 %v2691_v4 }
 0x1c1   : > { %v2141_v44 = vpop.eup %2140  ;;  %2150 = vrcp.f32 %v770_v39 }
 0x1c2   : > { %2152 = vpow2.f32 %v1829_v41  ;;  %v1830_v47 = vmul.f32 -1.442695, %v696_v42  ;;  %vm831_vm6 = vcmp.lt.f32.partialorder %v815_v45, %v2141_v44  ;;  %v821_v41 = vld [vmem:[%s2671_s11 + $0x50] sm:$0xff]  ;;  %v822_v42 = vld [vmem:[%s2671_s11 + $0x58] sm:$0xff] }
 0x1c3   : > { %v2143_v48 = vpop.eup %2142 }
 0x1c4   : > { %v2145_v49 = vpop.eup %2144  ;;  %2154 = vpow2.f32 %v1830_v47  ;;  %vm832_vm7 = vcmp.lt.f32.partialorder %v816_v46, %v2143_v48 }
 0x1c5   : > { %v771_v50 = vadd.f32 1.0, %v2145_v49  ;;  %v700_v51 = vpop.f32.mrb[24].mxu0  ;;  %vm1855_vm8 = vmpackc.low %vm832_vm7, %vm831_vm6  ;;  %v823_v49 = vld [vmem:[%s2671_s11 + $0x60] sm:$0xff] }
 0x1c6   : > { %v2147_v52 = vpop.eup %2146  ;;  %v701_v53 = vadd.f32 %v2795_v8, %v700_v51  ;;  %v702_v54 = vpop.f32.mrb[25].mxu0  ;;  %1856 = vmatmul.mubr.msk.bf16.gmra.mrb[8].mxu1 %vm1855_vm8, %v2427_v22 }
 0x1c7   : > { %2156 = vrcp.f32 %v771_v50  ;;  %v772_v55 = vadd.f32 1.0, %v2147_v52  ;;  %v703_v56 = vpop.f32.mrb[26].mxu0  ;;  %945 = vmatprep.mubr.bf16.mxu1 %v2426_v7  ;;  %1081 = vmatpush1.bf16.xpose.msra.mxu1 %v2695_v5  ;;  %v824_v50 = vld [vmem:[%s2671_s11 + $0x68] sm:$0xff]  ;;  %v826_v54 = vld [vmem:[%s2671_s11 + $0x78] sm:$0xff] }
 0x1c8   : > { %v1831_v57 = vmul.f32 -1.442695, %v701_v53  ;;  %v704_v58 = vadd.f32 %v2795_v8, %v703_v56  ;;  %v705_v59 = vpop.f32.mrb[27].mxu0  ;;  %1082 = vmatprep.subr.bf16.mxu1 %v2697_v6  ;;  %v825_v53 = vld [vmem:[%s2671_s11 + $0x70] sm:$0xff]  ;;  %v480_v56 = vlaneseq }
 0x1c9   : > { %v2149_v60 = vpop.eup %2148  ;;  %2158 = vrcp.f32 %v772_v55  ;;  %v478_v59 = vld [vmem:[%s3221_s3] sm:$0x3] }
 0x1ca   : > { %2160 = vpow2.f32 %v1831_v57  ;;  %v1832_v63 = vmul.f32 -1.442695, %v704_v58  ;;  %vm833_vm9 = vcmp.lt.f32.partialorder %v817_v61, %v2149_v60  ;;  %v481_v57 = vshrl.u32 %v480_v56, 7 }
 0x1cb   : > { %v2151_v9 = vpop.eup %2150 }
 0x1cc   : > { %v2153_v19 = vpop.eup %2152  ;;  %2162 = vpow2.f32 %v1832_v63  ;;  %vm834_vm10 = vcmp.lt.f32.partialorder %v818_v62, %v2151_v9  ;;  %v482_v58 = vsub.s32 0, %v481_v57  ;;  %v486_v60 = vsub.s32 1, %v481_v57 }
 0x1cd   : > { %v773_v20 = vadd.f32 1.0, %v2153_v19  ;;  %v708_v21 = vpop.f32.mrb[28].mxu0  ;;  %vm1857_vm11 = vmpackc.low %vm834_vm10, %vm833_vm9 }
 0x1ce   : > { %v2155_v23 = vpop.eup %2154  ;;  %v709_v24 = vadd.f32 %v2795_v8, %v708_v21  ;;  %v710_v25 = vpop.f32.mrb[29].mxu0  ;;  %1858 = vmatmul.mubr.msk.bf16.gmra.mrb[12].mxu1 %vm1857_vm11, %v2427_v22  ;;  %v2864_v61 = vrot.slane %v478_v59, %v482_v58  ;;  %v2866_v62 = vrot.slane %v478_v59, %v486_v60  ;;  %v1006_v58 = vld [vmem:[%s2869_s8 + $0x50] sm:$0xff] }
 0x1cf   : > { %2164 = vrcp.f32 %v773_v20  ;;  %v774_v26 = vadd.f32 1.0, %v2155_v23  ;;  %v711_v27 = vpop.f32.mrb[30].mxu0  ;;  %955 = vmatprep.mubr.bf16.mxu1 %v2426_v7  ;;  %1083 = vmatpush1.bf16.xpose.msra.mxu1 %v2705_v10  ;;  %v998_v23 = vld [vmem:[%s2869_s8 + $0x10] sm:$0xff] }
 0x1d0   : > { %v1833_v28 = vmul.f32 -1.442695, %v709_v24  ;;  %v712_v29 = vadd.f32 %v2795_v8, %v711_v27  ;;  %v713_v30 = vpop.f32.mrb[31].mxu0  ;;  %1084 = vmatprep.subr.bf16.mxu1 %v2707_v11  ;;  %v997_v24 = vld [vmem:[%s2869_s8 + $0x8] sm:$0xff]  ;;  %v999_v27 = vld [vmem:[%s2869_s8 + $0x18] sm:$0xff] }
 0x1d1   : > { %v2157_v31 = vpop.eup %2156  ;;  %2166 = vrcp.f32 %v774_v26 }
 0x1d2   : > { %2168 = vpow2.f32 %v1833_v28  ;;  %v1834_v34 = vmul.f32 -1.442695, %v712_v29  ;;  %vm835_vm12 = vcmp.lt.f32.partialorder %v819_v32, %v2157_v31 }
 0x1d3   : > { %v2159_v35 = vpop.eup %2158 }
 0x1d4   : > { %v2161_v36 = vpop.eup %2160  ;;  %2170 = vpow2.f32 %v1834_v34  ;;  %vm836_vm13 = vcmp.lt.f32.partialorder %v820_v33, %v2159_v35 }
 0x1d5   : > { %v775_v37 = vadd.f32 1.0, %v2161_v36  ;;  %vm1859_vm14 = vmpackc.low %vm836_vm13, %vm835_vm12 }
 0x1d6   : > { %v2163_v38 = vpop.eup %2162  ;;  %1860 = vmatmul.mubr.msk.bf16.gmra.mrb[16].mxu1 %vm1859_vm14, %v2427_v22 }
 0x1d7   : > { %2172 = vrcp.f32 %v775_v37  ;;  %v776_v39 = vadd.f32 1.0, %v2163_v38  ;;  %965 = vmatprep.mubr.bf16.mxu1 %v2426_v7  ;;  %1085 = vmatpush1.bf16.xpose.msra.mxu1 %v2711_v12  ;;  %v1000_v38 = vld [vmem:[%s2869_s8 + $0x20] sm:$0xff] }
 0x1d8   : > { %1086 = vmatprep.subr.bf16.mxu1 %v2713_v13 }
 0x1d9   : > { %v2165_v40 = vpop.eup %2164  ;;  %2174 = vrcp.f32 %v776_v39 }
 0x1da   : > { %vm837_vm15 = vcmp.lt.f32.partialorder %v821_v41, %v2165_v40  ;;  %v1002_v41 = vld [vmem:[%s2869_s8 + $0x30] sm:$0xff] }
 0x1db   : > { %v2167_v43 = vpop.eup %2166 }
 0x1dc   : > { %v2169_v44 = vpop.eup %2168  ;;  %vm838_vm0 = vcmp.lt.f32.partialorder %v822_v42, %v2167_v43  ;;  %v1001_v42 = vld [vmem:[%s2869_s8 + $0x28] sm:$0xff] }
 0x1dd   : > { %v777_v45 = vadd.f32 1.0, %v2169_v44  ;;  %vm1861_vm1 = vmpackc.low %vm838_vm0, %vm837_vm15 }
 0x1de   : > { %v2171_v46 = vpop.eup %2170  ;;  %1862 = vmatmul.mubr.msk.bf16.gmra.mrb[20].mxu1 %vm1861_vm1, %v2427_v22 }
 0x1df   : > { %2176 = vrcp.f32 %v777_v45  ;;  %v778_v47 = vadd.f32 1.0, %v2171_v46  ;;  %975 = vmatprep.mubr.bf16.mxu1 %v2426_v7  ;;  %1087 = vmatpush1.bf16.xpose.msra.mxu1 %v2719_v14  ;;  %v1003_v45 = vld [vmem:[%s2869_s8 + $0x38] sm:$0xff] }
 0x1e0   : > { %1088 = vmatprep.subr.bf16.mxu1 %v2721_v15 }
 0x1e1   : > { %v2173_v48 = vpop.eup %2172  ;;  %2178 = vrcp.f32 %v778_v47 }
 0x1e2   : > { %vm839_vm2 = vcmp.lt.f32.partialorder %v823_v49, %v2173_v48 }
 0x1e3   : > { %v2175_v51 = vpop.eup %2174 }
 0x1e4   : > { %vm840_vm3 = vcmp.lt.f32.partialorder %v824_v50, %v2175_v51 }
 0x1e5   : > { %vm1863_vm4 = vmpackc.low %vm840_vm3, %vm839_vm2 }
 0x1e6   : > { %1864 = vmatmul.mubr.msk.bf16.gmra.mrb[24].mxu1 %vm1863_vm4, %v2427_v22 }
 0x1e7   : > { %985 = vmatprep.mubr.bf16.mxu1 %v2426_v7  ;;  %1089 = vmatpush1.bf16.xpose.msra.mxu1 %v2725_v16 }
 0x1e8   : > { %1090 = vmatprep.subr.bf16.mxu1 %v2727_v17 }
 0x1e9   : > { %v2177_v52 = vpop.eup %2176 }
 0x1ea   : > { %vm841_vm5 = vcmp.lt.f32.partialorder %v825_v53, %v2177_v52 }
 0x1eb   : > { %v2179_v55 = vpop.eup %2178 }
 0x1ec   : > { %vm842_vm6 = vcmp.lt.f32.partialorder %v826_v54, %v2179_v55 }
 0x1ed   : > { %vm1865_vm7 = vmpackc.low %vm842_vm6, %vm841_vm5 }
 0x1ee   : > { %1866 = vmatmul.mubr.msk.bf16.gmra.mrb[28].mxu1 %vm1865_vm7, %v2427_v22 }
 0x1ef   : > { %1091 = vmatpush1.bf16.xpose.msra.mxu1 %v2733_v18 }
 0x1f0   : > { %1982 = vmatprep.subr.bf16.mxu1 %v2677_v0  ;;  %v996_v0 = vld [vmem:[%s2869_s8] sm:$0xff] }
 0x289   : > { %v917_v63 = vpop.f32.mrb[0].mxu1 }
 0x28a   : > { %v918_v9 = vadd.f32 %v917_v63, %v2864_v61  ;;  %v919_v19 = vpop.f32.mrb[1].mxu1  ;;  %v1007_v63 = vld [vmem:[%s2869_s8 + $0x58] sm:$0xff] }
 0x28b   : > { %v920_v20 = vadd.f32 %v919_v19, %v2866_v62  ;;  %v921_v21 = vpop.f32.mrb[2].mxu1 }
 0x28c   : > { %v922_v25 = vadd.f32 %v921_v21, %v2864_v61  ;;  %v923_v26 = vpop.f32.mrb[3].mxu1  ;;  %v1028_v29 = vadd.f32 %v996_v0, %v918_v9 }
 0x28d   : > { %v924_v28 = vadd.f32 %v923_v26, %v2866_v62  ;;  %v1029_v31 = vadd.f32 %v997_v24, %v920_v20 }
 0x28e   : > { %v1030_v30 = vadd.f32 %v998_v23, %v922_v25 }
 0x28f   : > { %v1031_v32 = vadd.f32 %v999_v27, %v924_v28  ;;  %v1010_v28 = vld [vmem:[%s2869_s8 + $0x70] sm:$0xff] }
 0x290   : > { %v1060_v33 = vpack.c.bf16 %v1030_v30, %v1028_v29 }
 0x291   : > { %v927_v34 = vpop.f32.mrb[4].mxu1  ;;  %v1061_v35 = vpack.c.bf16 %v1031_v32, %v1029_v31  ;;  %v1011_v31 = vld [vmem:[%s2869_s8 + $0x78] sm:$0xff] }
 0x292   : > { %v928_v36 = vadd.f32 %v927_v34, %v2864_v61  ;;  %v929_v37 = vpop.f32.mrb[5].mxu1 }
 0x293   : > { %v930_v39 = vadd.f32 %v929_v37, %v2866_v62  ;;  %v931_v40 = vpop.f32.mrb[6].mxu1  ;;  %1108 = vmatprep.mubr.bf16.mxu1 %v1061_v35 }
 0x294   : > { %v932_v43 = vadd.f32 %v931_v40, %v2864_v61  ;;  %v933_v44 = vpop.f32.mrb[7].mxu1  ;;  %1109 = vmatmul.mubr.bf16.vlgmr.msra.gmra.mrb[32].mxu1 %v1060_v33  ;;  %v1032_v47 = vadd.f32 %v1000_v38, %v928_v36 }
 0x295   : > { %v934_v46 = vadd.f32 %v933_v44, %v2866_v62  ;;  %1990 = vmatpush1.bf16.msra.mxu1 %v2679_v1  ;;  %v1033_v49 = vadd.f32 %v1001_v42, %v930_v39  ;;  %v1004_v1 = vld [vmem:[%s2869_s8 + $0x40] sm:$0xff]  ;;  %v1014_v42 = vld [vmem:[%s2869_s8 + $0x90] sm:$0xff] }
 0x296   : > { %v1034_v48 = vadd.f32 %v1002_v41, %v932_v43  ;;  %1983 = vmatprep.subr.bf16.mxu1 %v2682_v2  ;;  %v1005_v2 = vld [vmem:[%s2869_s8 + $0x48] sm:$0xff] }
 0x297   : > { %v1035_v50 = vadd.f32 %v1003_v45, %v934_v46  ;;  %v1015_v45 = vld [vmem:[%s2869_s8 + $0x98] sm:$0xff] }
 0x298   : > { %v1062_v51 = vpack.c.bf16 %v1034_v48, %v1032_v47 }
 0x299   : > { %v937_v52 = vpop.f32.mrb[8].mxu1  ;;  %v1063_v53 = vpack.c.bf16 %v1035_v50, %v1033_v49  ;;  %1991 = vmatpush1.bf16.msra.mxu1 %v2689_v3 }
 0x29a   : > { %v938_v54 = vadd.f32 %v937_v52, %v2864_v61  ;;  %v939_v55 = vpop.f32.mrb[9].mxu1  ;;  %1984 = vmatprep.subr.bf16.mxu1 %v2691_v4 }
 0x29b   : > { %v940_v56 = vadd.f32 %v939_v55, %v2866_v62  ;;  %v941_v57 = vpop.f32.mrb[10].mxu1  ;;  %1116 = vmatprep.mubr.bf16.mxu1 %v1063_v53 }
 0x29c   : > { %v942_v59 = vadd.f32 %v941_v57, %v2864_v61  ;;  %v943_v60 = vpop.f32.mrb[11].mxu1  ;;  %1117 = vmatmul.mubr.bf16.gmra.mrb[36].mxu1 %v1062_v51  ;;  %v1036_v9 = vadd.f32 %v1004_v1, %v938_v54  ;;  %v1016_v54 = vld [vmem:[%s2869_s8 + $0xa0] sm:$0xff]  ;;  %v1018_v1 = vld [vmem:[%s2869_s8 + $0xb0] sm:$0xff] }
 0x29d   : > { %v944_v3 = vadd.f32 %v943_v60, %v2866_v62  ;;  %1992 = vmatpush1.bf16.msra.mxu1 %v2695_v5  ;;  %v1037_v19 = vadd.f32 %v1005_v2, %v940_v56  ;;  %v1008_v5 = vld [vmem:[%s2869_s8 + $0x60] sm:$0xff]  ;;  %v1017_v56 = vld [vmem:[%s2869_s8 + $0xa8] sm:$0xff] }
 0x29e   : > { %v1038_v4 = vadd.f32 %v1006_v58, %v942_v59  ;;  %1985 = vmatprep.subr.bf16.mxu1 %v2697_v6  ;;  %v1009_v6 = vld [vmem:[%s2869_s8 + $0x68] sm:$0xff]  ;;  %v1019_v58 = vld [vmem:[%s2869_s8 + $0xb8] sm:$0xff] }
 0x29f   : > { %v1039_v0 = vadd.f32 %v1007_v63, %v944_v3 }
 0x2a0   : > { %v1064_v20 = vpack.c.bf16 %v1038_v4, %v1036_v9 }
 0x2a1   : > { %v947_v21 = vpop.f32.mrb[12].mxu1  ;;  %v1065_v23 = vpack.c.bf16 %v1039_v0, %v1037_v19  ;;  %1993 = vmatpush1.bf16.msra.mxu1 %v2705_v10 }
 0x2a2   : > { %v948_v24 = vadd.f32 %v947_v21, %v2864_v61  ;;  %v949_v25 = vpop.f32.mrb[13].mxu1  ;;  %1986 = vmatprep.subr.bf16.mxu1 %v2707_v11 }
 0x2a3   : > { %v950_v26 = vadd.f32 %v949_v25, %v2866_v62  ;;  %v951_v27 = vpop.f32.mrb[14].mxu1  ;;  %1124 = vmatprep.mubr.bf16.mxu1 %v1065_v23  ;;  %v1021_v25 = vld [vmem:[%s2869_s8 + $0xc8] sm:$0xff] }
 0x2a4   : > { %v952_v29 = vadd.f32 %v951_v27, %v2864_v61  ;;  %v953_v30 = vpop.f32.mrb[15].mxu1  ;;  %1125 = vmatmul.mubr.bf16.gmra.mrb[40].mxu1 %v1064_v20  ;;  %v1040_v32 = vadd.f32 %v1008_v5, %v948_v24  ;;  %v1020_v20 = vld [vmem:[%s2869_s8 + $0xc0] sm:$0xff]  ;;  %v1022_v24 = vld [vmem:[%s2869_s8 + $0xd0] sm:$0xff]  ;;  %v1023_v27 = vld [vmem:[%s2869_s8 + $0xd8] sm:$0xff] }
 0x2a5   : > { %v954_v10 = vadd.f32 %v953_v30, %v2866_v62  ;;  %1994 = vmatpush1.bf16.msra.mxu1 %v2711_v12  ;;  %v1041_v33 = vadd.f32 %v1009_v6, %v950_v26  ;;  %v1012_v12 = vld [vmem:[%s2869_s8 + $0x80] sm:$0xff] }
 0x2a6   : > { %v1042_v11 = vadd.f32 %v1010_v28, %v952_v29  ;;  %1987 = vmatprep.subr.bf16.mxu1 %v2713_v13  ;;  %v1013_v13 = vld [vmem:[%s2869_s8 + $0x88] sm:$0xff] }
 0x2a7   : > { %v1043_v34 = vadd.f32 %v1011_v31, %v954_v10 }
 0x2a8   : > { %v1066_v35 = vpack.c.bf16 %v1042_v11, %v1040_v32 }
 0x2a9   : > { %v957_v36 = vpop.f32.mrb[16].mxu1  ;;  %v1067_v37 = vpack.c.bf16 %v1043_v34, %v1041_v33  ;;  %1995 = vmatpush1.bf16.msra.mxu1 %v2719_v14 }
 0x2aa   : > { %v958_v38 = vadd.f32 %v957_v36, %v2864_v61  ;;  %v959_v39 = vpop.f32.mrb[17].mxu1  ;;  %1988 = vmatprep.subr.bf16.mxu1 %v2721_v15 }
 0x2ab   : > { %v960_v40 = vadd.f32 %v959_v39, %v2866_v62  ;;  %v961_v41 = vpop.f32.mrb[18].mxu1  ;;  %1132 = vmatprep.mubr.bf16.mxu1 %v1067_v37  ;;  %v1025_v39 = vld [vmem:[%s2869_s8 + $0xe8] sm:$0xff] }
 0x2ac   : > { %v962_v43 = vadd.f32 %v961_v41, %v2864_v61  ;;  %v963_v44 = vpop.f32.mrb[19].mxu1  ;;  %1133 = vmatmul.mubr.bf16.gmra.mrb[44].mxu1 %v1066_v35  ;;  %v1044_v46 = vadd.f32 %v1012_v12, %v958_v38  ;;  %v1024_v35 = vld [vmem:[%s2869_s8 + $0xe0] sm:$0xff]  ;;  %v1026_v38 = vld [vmem:[%s2869_s8 + $0xf0] sm:$0xff]  ;;  %v1027_v41 = vld [vmem:[%s2869_s8 + $0xf8] sm:$0xff] }
 0x2ad   : > { %v964_v14 = vadd.f32 %v963_v44, %v2866_v62  ;;  %1996 = vmatpush1.bf16.msra.mxu1 %v2725_v16  ;;  %v1045_v47 = vadd.f32 %v1013_v13, %v960_v40 }
 0x2ae   : > { %v1046_v15 = vadd.f32 %v1014_v42, %v962_v43  ;;  %1989 = vmatprep.subr.bf16.mxu1 %v2727_v17 }
 0x2af   : > { %v1047_v48 = vadd.f32 %v1015_v45, %v964_v14 }
 0x2b0   : > { %v1068_v49 = vpack.c.bf16 %v1046_v15, %v1044_v46 }
 0x2b1   : > { %v967_v50 = vpop.f32.mrb[20].mxu1  ;;  %v1069_v51 = vpack.c.bf16 %v1047_v48, %v1045_v47  ;;  %1997 = vmatpush1.bf16.msra.mxu1 %v2733_v18 }
 0x2b2   : > { %v968_v52 = vadd.f32 %v967_v50, %v2864_v61  ;;  %v969_v53 = vpop.f32.mrb[21].mxu1 }
 0x2b3   : > { %v970_v55 = vadd.f32 %v969_v53, %v2866_v62  ;;  %v971_v16 = vpop.f32.mrb[22].mxu1  ;;  %1140 = vmatprep.mubr.bf16.mxu1 %v1069_v51 }
 0x2b4   : > { %v972_v17 = vadd.f32 %v971_v16, %v2864_v61  ;;  %v973_v57 = vpop.f32.mrb[23].mxu1  ;;  %1141 = vmatmul.mubr.bf16.gmra.mrb[48].mxu1 %v1068_v49  ;;  %v1048_v2 = vadd.f32 %v1016_v54, %v968_v52 }
 0x2b5   : > { %v974_v18 = vadd.f32 %v973_v57, %v2866_v62  ;;  %v1049_v60 = vadd.f32 %v1017_v56, %v970_v55 }
 0x2b6   : > { %v1050_v59 = vadd.f32 %v1018_v1, %v972_v17 }
 0x2b7   : > { %v1051_v63 = vadd.f32 %v1019_v58, %v974_v18 }
 0x2b8   : > { %v1070_v3 = vpack.c.bf16 %v1050_v59, %v1048_v2 }
 0x2b9   : > { %v977_v9 = vpop.f32.mrb[24].mxu1  ;;  %v1071_v4 = vpack.c.bf16 %v1051_v63, %v1049_v60 }
 0x2ba   : > { %v978_v19 = vadd.f32 %v977_v9, %v2864_v61  ;;  %v979_v0 = vpop.f32.mrb[25].mxu1 }
 0x2bb   : > { %v980_v21 = vadd.f32 %v979_v0, %v2866_v62  ;;  %v981_v23 = vpop.f32.mrb[26].mxu1  ;;  %1148 = vmatprep.mubr.bf16.mxu1 %v1071_v4 }
 0x2bc   : > { %v982_v5 = vadd.f32 %v981_v23, %v2864_v61  ;;  %v983_v26 = vpop.f32.mrb[27].mxu1  ;;  %1149 = vmatmul.mubr.bf16.gmra.mrb[52].mxu1 %v1070_v3  ;;  %v1052_v6 = vadd.f32 %v1020_v20, %v978_v19 }
 0x2bd   : > { %v984_v28 = vadd.f32 %v983_v26, %v2866_v62  ;;  %v1053_v30 = vadd.f32 %v1021_v25, %v980_v21 }
 0x2be   : > { %v1054_v29 = vadd.f32 %v1022_v24, %v982_v5 }
 0x2bf   : > { %v1055_v31 = vadd.f32 %v1023_v27, %v984_v28 }
 0x2c0   : > { %v1072_v10 = vpack.c.bf16 %v1054_v29, %v1052_v6 }
 0x2c1   : > { %v987_v32 = vpop.f32.mrb[28].mxu1  ;;  %v1073_v11 = vpack.c.bf16 %v1055_v31, %v1053_v30 }
 0x2c2   : > { %v988_v33 = vadd.f32 %v987_v32, %v2864_v61  ;;  %v989_v34 = vpop.f32.mrb[29].mxu1  ;;  %v1883_v32 = vld [vmem:[%s2671_s11 + $0x80] sm:$0xff] }
 0x2c3   : > { %v990_v36 = vadd.f32 %v989_v34, %v2866_v62  ;;  %v991_v37 = vpop.f32.mrb[30].mxu1  ;;  %1156 = vmatprep.mubr.bf16.mxu1 %v1073_v11  ;;  %v1884_v11 = vld [vmem:[%s2671_s11 + $0x88] sm:$0xff] }
 0x2c4   : > { %v992_v12 = vadd.f32 %v991_v37, %v2864_v61  ;;  %v993_v40 = vpop.f32.mrb[31].mxu1  ;;  %1157 = vmatmul.mubr.bf16.gmra.mrb[56].mxu1 %v1072_v10  ;;  %v1056_v13 = vadd.f32 %v1024_v35, %v988_v33 }
 0x2c5   : > { %v994_v42 = vadd.f32 %v993_v40, %v2866_v62  ;;  %v1057_v44 = vadd.f32 %v1025_v39, %v990_v36 }
 0x2c6   : > { %v1058_v43 = vadd.f32 %v1026_v38, %v992_v12 }
 0x2c7   : > { %v1059_v45 = vadd.f32 %v1027_v41, %v994_v42 }
 0x2c8   : > { %v1074_v14 = vpack.c.bf16 %v1058_v43, %v1056_v13 }
 0x2c9   : > { %v1075_v46 = vpack.c.bf16 %v1059_v45, %v1057_v44  ;;  %v1885_v45 = vld [vmem:[%s2671_s11 + $0x90] sm:$0xff] }
 0x2cb   : > { %1164 = vmatprep.mubr.bf16.mxu1 %v1075_v46 }
 0x2cc   : > { %1165 = vmatmul.mubr.bf16.gmra.mrb[60].mxu1 %v1074_v14  ;;  %v1886_v14 = vld [vmem:[%s2671_s11 + $0x98] sm:$0xff] }
 0x2cd   : > { %1434 = vmatprep.mubr.bf16.mxu1 %v2426_v7 }
 0x367   : > { %v1110_v15 = vpop.f32.mrb[32].mxu1 }
 0x368   : > { %v1111_v47 = vadd.f32 %v2795_v8, %v1110_v15  ;;  %v1112_v48 = vpop.f32.mrb[33].mxu1 }
 0x369   : > { %v1113_v49 = vpop.f32.mrb[34].mxu1 }
 0x36a   : > { %v1867_v50 = vmul.f32 -1.442695, %v1111_v47  ;;  %v1114_v51 = vadd.f32 %v2795_v8, %v1113_v49  ;;  %v1115_v52 = vpop.f32.mrb[35].mxu1 }
 0x36c   : > { %2180 = vpow2.f32 %v1867_v50  ;;  %v1868_v53 = vmul.f32 -1.442695, %v1114_v51 }
 0x36e   : > { %2182 = vpow2.f32 %v1868_v53 }
 0x36f   : > { %v1118_v54 = vpop.f32.mrb[36].mxu1 }
 0x370   : > { %v1119_v55 = vadd.f32 %v2795_v8, %v1118_v54  ;;  %v1120_v16 = vpop.f32.mrb[37].mxu1 }
 0x371   : > { %v1121_v1 = vpop.f32.mrb[38].mxu1 }
 0x372   : > { %v1869_v56 = vmul.f32 -1.442695, %v1119_v55  ;;  %v1122_v17 = vadd.f32 %v2795_v8, %v1121_v1  ;;  %v1123_v57 = vpop.f32.mrb[39].mxu1 }
 0x373   : > { %v1888_v57 = vld [vmem:[%s2671_s11 + $0xa8] sm:$0xff] }
 0x374   : > { %2184 = vpow2.f32 %v1869_v56  ;;  %v1870_v58 = vmul.f32 -1.442695, %v1122_v17  ;;  %v1887_v17 = vld [vmem:[%s2671_s11 + $0xa0] sm:$0xff] }
 0x376   : > { %v2181_v18 = vpop.eup %2180  ;;  %2186 = vpow2.f32 %v1870_v58 }
 0x377   : > { %v1221_v2 = vadd.f32 1.0, %v2181_v18  ;;  %v1126_v59 = vpop.f32.mrb[40].mxu1 }
 0x378   : > { %v2183_v60 = vpop.eup %2182  ;;  %v1127_v63 = vadd.f32 %v2795_v8, %v1126_v59  ;;  %v1128_v3 = vpop.f32.mrb[41].mxu1 }
 0x379   : > { %2188 = vrcp.f32 %v1221_v2  ;;  %v1222_v9 = vadd.f32 1.0, %v2183_v60  ;;  %v1129_v4 = vpop.f32.mrb[42].mxu1 }
 0x37a   : > { %v1871_v19 = vmul.f32 -1.442695, %v1127_v63  ;;  %v1130_v0 = vadd.f32 %v2795_v8, %v1129_v4  ;;  %v1131_v20 = vpop.f32.mrb[43].mxu1 }
 0x37b   : > { %2190 = vrcp.f32 %v1222_v9 }
 0x37c   : > { %2192 = vpow2.f32 %v1871_v19  ;;  %v1872_v21 = vmul.f32 -1.442695, %v1130_v0 }
 0x37e   : > { %v2185_v23 = vpop.eup %2184  ;;  %2194 = vpow2.f32 %v1872_v21 }
 0x37f   : > { %v1223_v24 = vadd.f32 1.0, %v2185_v23  ;;  %v1134_v25 = vpop.f32.mrb[44].mxu1 }
 0x380   : > { %v2187_v5 = vpop.eup %2186  ;;  %v1135_v26 = vadd.f32 %v2795_v8, %v1134_v25  ;;  %v1136_v27 = vpop.f32.mrb[45].mxu1  ;;  %v1890_v25 = vld [vmem:[%s2671_s11 + $0xb8] sm:$0xff] }
 0x381   : > { %2196 = vrcp.f32 %v1223_v24  ;;  %v1224_v28 = vadd.f32 1.0, %v2187_v5  ;;  %v1137_v6 = vpop.f32.mrb[46].mxu1  ;;  %v1889_v24 = vld [vmem:[%s2671_s11 + $0xb0] sm:$0xff] }
 0x382   : > { %v1873_v29 = vmul.f32 -1.442695, %v1135_v26  ;;  %v1138_v30 = vadd.f32 %v2795_v8, %v1137_v6  ;;  %v1139_v31 = vpop.f32.mrb[47].mxu1 }
 0x383   : > { %v2189_v10 = vpop.eup %2188  ;;  %2198 = vrcp.f32 %v1224_v28 }
 0x384   : > { %2200 = vpow2.f32 %v1873_v29  ;;  %v1874_v33 = vmul.f32 -1.442695, %v1138_v30  ;;  %vm1286_vm8 = vcmp.lt.f32.partialorder %v1883_v32, %v2189_v10 }
 0x385   : > { %v2191_v34 = vpop.eup %2190 }
 0x386   : > { %v2193_v35 = vpop.eup %2192  ;;  %2202 = vpow2.f32 %v1874_v33  ;;  %vm1287_vm9 = vcmp.lt.f32.partialorder %v1884_v11, %v2191_v34 }
 0x387   : > { %v1225_v36 = vadd.f32 1.0, %v2193_v35  ;;  %v1142_v37 = vpop.f32.mrb[48].mxu1  ;;  %vm1915_vm10 = vmpackc.low %vm1287_vm9, %vm1286_vm8 }
 0x388   : > { %v2195_v38 = vpop.eup %2194  ;;  %v1143_v39 = vadd.f32 %v2795_v8, %v1142_v37  ;;  %v1144_v12 = vpop.f32.mrb[49].mxu1  ;;  %1916 = vmatmul.mubr.msk.bf16.vlgmr.msra.gmra.mrb[32].mxu0 %vm1915_vm10, %v2427_v22  ;;  %v1892_v37 = vld [vmem:[%s2671_s11 + $0xc8] sm:$0xff] }
 0x389   : > { %2204 = vrcp.f32 %v1225_v36  ;;  %v1226_v40 = vadd.f32 1.0, %v2195_v38  ;;  %v1145_v41 = vpop.f32.mrb[50].mxu1  ;;  %1384 = vmatprep.mubr.bf16.mxu0 %v2426_v7  ;;  %v1891_v36 = vld [vmem:[%s2671_s11 + $0xc0] sm:$0xff] }
 0x38a   : > { %v1875_v42 = vmul.f32 -1.442695, %v1143_v39  ;;  %v1146_v13 = vadd.f32 %v2795_v8, %v1145_v41  ;;  %v1147_v43 = vpop.f32.mrb[51].mxu1 }
 0x38b   : > { %v2197_v44 = vpop.eup %2196  ;;  %2206 = vrcp.f32 %v1226_v40  ;;  %v1893_v43 = vld [vmem:[%s2671_s11 + $0xd0] sm:$0xff] }
 0x38c   : > { %2208 = vpow2.f32 %v1875_v42  ;;  %v1876_v46 = vmul.f32 -1.442695, %v1146_v13  ;;  %vm1288_vm11 = vcmp.lt.f32.partialorder %v1885_v45, %v2197_v44  ;;  %v1894_v44 = vld [vmem:[%s2671_s11 + $0xd8] sm:$0xff] }
 0x38d   : > { %v2199_v15 = vpop.eup %2198 }
 0x38e   : > { %v2201_v47 = vpop.eup %2200  ;;  %2210 = vpow2.f32 %v1876_v46  ;;  %vm1289_vm12 = vcmp.lt.f32.partialorder %v1886_v14, %v2199_v15 }
 0x38f   : > { %v1227_v48 = vadd.f32 1.0, %v2201_v47  ;;  %v1150_v49 = vpop.f32.mrb[52].mxu1  ;;  %vm1917_vm13 = vmpackc.low %vm1289_vm12, %vm1288_vm11 }
 0x390   : > { %v2203_v50 = vpop.eup %2202  ;;  %v1151_v51 = vadd.f32 %v2795_v8, %v1150_v49  ;;  %v1152_v52 = vpop.f32.mrb[53].mxu1  ;;  %1918 = vmatmul.mubr.msk.bf16.gmra.mrb[36].mxu0 %vm1917_vm13, %v2427_v22  ;;  %v1895_v49 = vld [vmem:[%s2671_s11 + $0xe0] sm:$0xff] }
 0x391   : > { %2212 = vrcp.f32 %v1227_v48  ;;  %v1228_v53 = vadd.f32 1.0, %v2203_v50  ;;  %v1153_v54 = vpop.f32.mrb[54].mxu1  ;;  %1394 = vmatprep.mubr.bf16.mxu0 %v2426_v7  ;;  %v1896_v50 = vld [vmem:[%s2671_s11 + $0xe8] sm:$0xff] }
 0x392   : > { %v1877_v55 = vmul.f32 -1.442695, %v1151_v51  ;;  %v1154_v16 = vadd.f32 %v2795_v8, %v1153_v54  ;;  %v1155_v1 = vpop.f32.mrb[55].mxu1  ;;  %v2244_v8 = vld [vmem:[%s3220_s2] ss:$0 sm:$0xff]  ;;  %v1898_v54 = vld [vmem:[%s2671_s11 + $0xf8] sm:$0xff] }
 0x393   : > { %v2205_v56 = vpop.eup %2204  ;;  %2214 = vrcp.f32 %v1228_v53  ;;  %v1897_v53 = vld [vmem:[%s2671_s11 + $0xf0] sm:$0xff]  ;;  %v1931_v1 = vld [vmem:[%s2869_s8 + $0x100] sm:$0xff] }
 0x394   : > { %2216 = vpow2.f32 %v1877_v55  ;;  %v1878_v58 = vmul.f32 -1.442695, %v1154_v16  ;;  %vm1290_vm14 = vcmp.lt.f32.partialorder %v1887_v17, %v2205_v56 }
 0x395   : > { %v2207_v18 = vpop.eup %2206 }
 0x396   : > { %v2209_v2 = vpop.eup %2208  ;;  %2218 = vpow2.f32 %v1878_v58  ;;  %vm1291_vm15 = vcmp.lt.f32.partialorder %v1888_v57, %v2207_v18  ;;  %v1932_v57 = vld [vmem:[%s2869_s8 + $0x108] sm:$0xff]  ;;  %v1933_v18 = vld [vmem:[%s2869_s8 + $0x110] sm:$0xff] }
 0x397   : > { %v1229_v59 = vadd.f32 1.0, %v2209_v2  ;;  %v1158_v60 = vpop.f32.mrb[56].mxu1  ;;  %vm1919_vm0 = vmpackc.low %vm1291_vm15, %vm1290_vm14 }
 0x398   : > { %v2211_v63 = vpop.eup %2210  ;;  %v1159_v3 = vadd.f32 %v2244_v8, %v1158_v60  ;;  %v1160_v9 = vpop.f32.mrb[57].mxu1  ;;  %1920 = vmatmul.mubr.msk.bf16.gmra.mrb[40].mxu0 %vm1919_vm0, %v2427_v22  ;;  %v1934_v60 = vld [vmem:[%s2869_s8 + $0x118] sm:$0xff] }
 0x399   : > { %2220 = vrcp.f32 %v1229_v59  ;;  %v1230_v4 = vadd.f32 1.0, %v2211_v63  ;;  %v1161_v19 = vpop.f32.mrb[58].mxu1  ;;  %1404 = vmatprep.mubr.bf16.mxu0 %v2426_v7 }
 0x39a   : > { %v1879_v0 = vmul.f32 -1.442695, %v1159_v3  ;;  %v1162_v20 = vadd.f32 %v2244_v8, %v1161_v19  ;;  %v1163_v21 = vpop.f32.mrb[59].mxu1  ;;  %v1935_v19 = vld [vmem:[%s2869_s8 + $0x120] sm:$0xff] }
 0x39b   : > { %v2213_v23 = vpop.eup %2212  ;;  %2222 = vrcp.f32 %v1230_v4  ;;  %v1936_v21 = vld [vmem:[%s2869_s8 + $0x128] sm:$0xff] }
 0x39c   : > { %2224 = vpow2.f32 %v1879_v0  ;;  %v1880_v5 = vmul.f32 -1.442695, %v1162_v20  ;;  %vm1292_vm1 = vcmp.lt.f32.partialorder %v1889_v24, %v2213_v23 }
 0x39d   : > { %v2215_v26 = vpop.eup %2214 }
 0x39e   : > { %v2217_v27 = vpop.eup %2216  ;;  %2226 = vpow2.f32 %v1880_v5  ;;  %vm1293_vm2 = vcmp.lt.f32.partialorder %v1890_v25, %v2215_v26  ;;  %v1937_v25 = vld [vmem:[%s2869_s8 + $0x130] sm:$0xff] }
 0x39f   : > { %v1231_v28 = vadd.f32 1.0, %v2217_v27  ;;  %v1166_v6 = vpop.f32.mrb[60].mxu1  ;;  %vm1921_vm3 = vmpackc.low %vm1293_vm2, %vm1292_vm1 }
 0x3a0   : > { %v2219_v29 = vpop.eup %2218  ;;  %v1167_v30 = vadd.f32 %v2244_v8, %v1166_v6  ;;  %v1168_v31 = vpop.f32.mrb[61].mxu1  ;;  %1922 = vmatmul.mubr.msk.bf16.gmra.mrb[44].mxu0 %vm1921_vm3, %v2427_v22 }
 0x3a1   : > { %2228 = vrcp.f32 %v1231_v28  ;;  %v1232_v10 = vadd.f32 1.0, %v2219_v29  ;;  %v1169_v32 = vpop.f32.mrb[62].mxu1  ;;  %1414 = vmatprep.mubr.bf16.mxu0 %v2426_v7  ;;  %v1938_v28 = vld [vmem:[%s2869_s8 + $0x138] sm:$0xff] }
 0x3a2   : > { %v1881_v11 = vmul.f32 -1.442695, %v1167_v30  ;;  %v1170_v33 = vadd.f32 %v2244_v8, %v1169_v32  ;;  %v1171_v34 = vpop.f32.mrb[63].mxu1  ;;  %v1939_v32 = vld [vmem:[%s2869_s8 + $0x140] sm:$0xff] }
 0x3a3   : > { %v2221_v35 = vpop.eup %2220  ;;  %2230 = vrcp.f32 %v1232_v10  ;;  %v1940_v34 = vld [vmem:[%s2869_s8 + $0x148] sm:$0xff] }
 0x3a4   : > { %2232 = vpow2.f32 %v1881_v11  ;;  %v1882_v38 = vmul.f32 -1.442695, %v1170_v33  ;;  %vm1294_vm4 = vcmp.lt.f32.partialorder %v1891_v36, %v2221_v35 }
 0x3a5   : > { %v2223_v39 = vpop.eup %2222 }
 0x3a6   : > { %v2225_v12 = vpop.eup %2224  ;;  %2234 = vpow2.f32 %v1882_v38  ;;  %vm1295_vm5 = vcmp.lt.f32.partialorder %v1892_v37, %v2223_v39  ;;  %v1941_v37 = vld [vmem:[%s2869_s8 + $0x150] sm:$0xff] }
 0x3a7   : > { %v1233_v40 = vadd.f32 1.0, %v2225_v12  ;;  %vm1923_vm6 = vmpackc.low %vm1295_vm5, %vm1294_vm4 }
 0x3a8   : > { %v2227_v41 = vpop.eup %2226  ;;  %1924 = vmatmul.mubr.msk.bf16.gmra.mrb[48].mxu0 %vm1923_vm6, %v2427_v22 }
 0x3a9   : > { %2236 = vrcp.f32 %v1233_v40  ;;  %v1234_v42 = vadd.f32 1.0, %v2227_v41  ;;  %1424 = vmatprep.mubr.bf16.mxu0 %v2426_v7  ;;  %v1942_v40 = vld [vmem:[%s2869_s8 + $0x158] sm:$0xff] }
 0x3ab   : > { %v2229_v13 = vpop.eup %2228  ;;  %2238 = vrcp.f32 %v1234_v42 }
 0x3ac   : > { %vm1296_vm7 = vcmp.lt.f32.partialorder %v1893_v43, %v2229_v13 }
 0x3ad   : > { %v2231_v45 = vpop.eup %2230 }
 0x3ae   : > { %v2233_v14 = vpop.eup %2232  ;;  %vm1297_vm8 = vcmp.lt.f32.partialorder %v1894_v44, %v2231_v45  ;;  %v1943_v45 = vld [vmem:[%s2869_s8 + $0x160] sm:$0xff] }
 0x3af   : > { %v1235_v46 = vadd.f32 1.0, %v2233_v14  ;;  %vm1925_vm9 = vmpackc.low %vm1297_vm8, %vm1296_vm7 }
 0x3b0   : > { %v2235_v15 = vpop.eup %2234  ;;  %1926 = vmatmul.mubr.msk.bf16.gmra.mrb[52].mxu0 %vm1925_vm9, %v2427_v22 }
 0x3b1   : > { %2240 = vrcp.f32 %v1235_v46  ;;  %v1236_v47 = vadd.f32 1.0, %v2235_v15  ;;  %v1944_v15 = vld [vmem:[%s2869_s8 + $0x168] sm:$0xff] }
 0x3b3   : > { %v2237_v48 = vpop.eup %2236  ;;  %2242 = vrcp.f32 %v1236_v47 }
 0x3b4   : > { %vm1298_vm10 = vcmp.lt.f32.partialorder %v1895_v49, %v2237_v48  ;;  %v1945_v49 = vld [vmem:[%s2869_s8 + $0x170] sm:$0xff] }
 0x3b5   : > { %v2239_v51 = vpop.eup %2238 }
 0x3b6   : > { %vm1299_vm11 = vcmp.lt.f32.partialorder %v1896_v50, %v2239_v51 }
 0x3b7   : > { %vm1927_vm12 = vmpackc.low %vm1299_vm11, %vm1298_vm10 }
 0x3b8   : > { %1928 = vmatmul.mubr.msk.bf16.vlgmr.msra.gmra.mrb[64].mxu1 %vm1927_vm12, %v2427_v22 }
 0x3b9   : > { %1444 = vmatprep.mubr.bf16.mxu1 %v2426_v7 }
 0x3bb   : > { %v2241_v52 = vpop.eup %2240 }
 0x3bc   : > { %vm1300_vm13 = vcmp.lt.f32.partialorder %v1897_v53, %v2241_v52  ;;  %v1946_v53 = vld [vmem:[%s2869_s8 + $0x178] sm:$0xff] }
 0x3bd   : > { %v2243_v55 = vpop.eup %2242 }
 0x3be   : > { %vm1301_vm14 = vcmp.lt.f32.partialorder %v1898_v54, %v2243_v55 }
 0x3bf   : > { %vm1929_vm15 = vmpackc.low %vm1301_vm14, %vm1300_vm13 }
 0x3c0   : > { %1930 = vmatmul.mubr.msk.bf16.gmra.mrb[68].mxu1 %vm1929_vm15, %v2427_v22 }
 0x45b   : > { %v1376_v16 = vpop.f32.mrb[32].mxu0 }
 0x45c   : > { %v1377_v56 = vadd.f32 %v1376_v16, %v2864_v61  ;;  %v1378_v17 = vpop.f32.mrb[33].mxu0 }
 0x45d   : > { %v1379_v7 = vadd.f32 %v1378_v17, %v2866_v62  ;;  %v1380_v58 = vpop.f32.mrb[34].mxu0  ;;  %v1947_v17 = vld [vmem:[%s2869_s8 + $0x180] sm:$0xff] }
 0x45e   : > { %v1488_v2 = vadd.f32 %v1931_v1, %v1377_v56  ;;  %1552 = vst [vmem:[%s3001_s9] sm:$0xff] %v1377_v56  ;;  %v1381_v22 = vadd.f32 %v1380_v58, %v2864_v61  ;;  %v1382_v59 = vpop.f32.mrb[35].mxu0  ;;  %v1948_v58 = vld [vmem:[%s2869_s8 + $0x188] sm:$0xff] }
 0x45f   : > { %v1489_v63 = vadd.f32 %v1932_v57, %v1379_v7  ;;  %1553 = vst [vmem:[%s3001_s9 + $0x8] sm:$0xff] %v1379_v7  ;;  %v1383_v8 = vadd.f32 %v1382_v59, %v2866_v62 }
 0x460   : > { %1520 = vst [vmem:[%s3009_s18] sm:$0xff] %v1488_v2  ;;  %v1490_v3 = vadd.f32 %v1933_v18, %v1381_v22  ;;  %1554 = vst [vmem:[%s3001_s9 + $0x10] sm:$0xff] %v1381_v22  ;;  %v1949_v22 = vld [vmem:[%s2869_s8 + $0x190] sm:$0xff] }
 0x461   : > { %1521 = vst [vmem:[%s3009_s18 + $0x8] sm:$0xff] %v1489_v63  ;;  %v1491_v9 = vadd.f32 %v1934_v60, %v1383_v8  ;;  %1555 = vst [vmem:[%s3001_s9 + $0x18] sm:$0xff] %v1383_v8  ;;  %v1950_v8 = vld [vmem:[%s2869_s8 + $0x198] sm:$0xff] }
 0x462   : > { %1522 = vst [vmem:[%s3009_s18 + $0x10] sm:$0xff] %v1490_v3 }
 0x463   : > { %1523 = vst [vmem:[%s3009_s18 + $0x18] sm:$0xff] %v1491_v9  ;;  %v1386_v4 = vpop.f32.mrb[36].mxu0 }
 0x464   : > { %v1387_v0 = vadd.f32 %v1386_v4, %v2864_v61  ;;  %v1388_v20 = vpop.f32.mrb[37].mxu0 }
 0x465   : > { %v1389_v23 = vadd.f32 %v1388_v20, %v2866_v62  ;;  %v1390_v24 = vpop.f32.mrb[38].mxu0  ;;  %v1951_v20 = vld [vmem:[%s2869_s8 + $0x1a0] sm:$0xff] }
 0x466   : > { %v1492_v5 = vadd.f32 %v1935_v19, %v1387_v0  ;;  %1556 = vst [vmem:[%s3001_s9 + $0x20] sm:$0xff] %v1387_v0  ;;  %v1391_v26 = vadd.f32 %v1390_v24, %v2864_v61  ;;  %v1392_v27 = vpop.f32.mrb[39].mxu0  ;;  %v1952_v24 = vld [vmem:[%s2869_s8 + $0x1a8] sm:$0xff] }
 0x467   : > { %v1493_v6 = vadd.f32 %v1936_v21, %v1389_v23  ;;  %1557 = vst [vmem:[%s3001_s9 + $0x28] sm:$0xff] %v1389_v23  ;;  %v1393_v29 = vadd.f32 %v1392_v27, %v2866_v62 }
 0x468   : > { %1524 = vst [vmem:[%s3009_s18 + $0x20] sm:$0xff] %v1492_v5  ;;  %v1494_v30 = vadd.f32 %v1937_v25, %v1391_v26  ;;  %1558 = vst [vmem:[%s3001_s9 + $0x30] sm:$0xff] %v1391_v26  ;;  %v1953_v26 = vld [vmem:[%s2869_s8 + $0x1b0] sm:$0xff] }
 0x469   : > { %1525 = vst [vmem:[%s3009_s18 + $0x28] sm:$0xff] %v1493_v6  ;;  %v1495_v31 = vadd.f32 %v1938_v28, %v1393_v29  ;;  %1559 = vst [vmem:[%s3001_s9 + $0x38] sm:$0xff] %v1393_v29  ;;  %v1954_v29 = vld [vmem:[%s2869_s8 + $0x1b8] sm:$0xff] }
 0x46a   : > { %1526 = vst [vmem:[%s3009_s18 + $0x30] sm:$0xff] %v1494_v30 }
 0x46b   : > { %1527 = vst [vmem:[%s3009_s18 + $0x38] sm:$0xff] %v1495_v31  ;;  %v1396_v10 = vpop.f32.mrb[40].mxu0 }
 0x46c   : > { %v1397_v11 = vadd.f32 %v1396_v10, %v2864_v61  ;;  %v1398_v33 = vpop.f32.mrb[41].mxu0 }
 0x46d   : > { %v1399_v35 = vadd.f32 %v1398_v33, %v2866_v62  ;;  %v1400_v36 = vpop.f32.mrb[42].mxu0  ;;  %v1955_v33 = vld [vmem:[%s2869_s8 + $0x1c0] sm:$0xff] }
 0x46e   : > { %v1496_v38 = vadd.f32 %v1939_v32, %v1397_v11  ;;  %1560 = vst [vmem:[%s3001_s9 + $0x40] sm:$0xff] %v1397_v11  ;;  %v1401_v39 = vadd.f32 %v1400_v36, %v2864_v61  ;;  %v1402_v12 = vpop.f32.mrb[43].mxu0  ;;  %v1956_v36 = vld [vmem:[%s2869_s8 + $0x1c8] sm:$0xff] }
 0x46f   : > { %v1497_v41 = vadd.f32 %v1940_v34, %v1399_v35  ;;  %1561 = vst [vmem:[%s3001_s9 + $0x48] sm:$0xff] %v1399_v35  ;;  %v1403_v42 = vadd.f32 %v1402_v12, %v2866_v62 }
 0x470   : > { %1528 = vst [vmem:[%s3009_s18 + $0x40] sm:$0xff] %v1496_v38  ;;  %v1498_v13 = vadd.f32 %v1941_v37, %v1401_v39  ;;  %1562 = vst [vmem:[%s3001_s9 + $0x50] sm:$0xff] %v1401_v39  ;;  %v1957_v39 = vld [vmem:[%s2869_s8 + $0x1d0] sm:$0xff] }
 0x471   : > { %1529 = vst [vmem:[%s3009_s18 + $0x48] sm:$0xff] %v1497_v41  ;;  %v1499_v43 = vadd.f32 %v1942_v40, %v1403_v42  ;;  %1563 = vst [vmem:[%s3001_s9 + $0x58] sm:$0xff] %v1403_v42  ;;  %v1958_v42 = vld [vmem:[%s2869_s8 + $0x1d8] sm:$0xff] }
 0x472   : > { %1530 = vst [vmem:[%s3009_s18 + $0x50] sm:$0xff] %v1498_v13 }
 0x473   : > { %1531 = vst [vmem:[%s3009_s18 + $0x58] sm:$0xff] %v1499_v43  ;;  %v1406_v44 = vpop.f32.mrb[44].mxu0 }
 0x474   : > { %v1407_v14 = vadd.f32 %v1406_v44, %v2864_v61  ;;  %v1408_v46 = vpop.f32.mrb[45].mxu0 }
 0x475   : > { %v1409_v47 = vadd.f32 %v1408_v46, %v2866_v62  ;;  %v1410_v48 = vpop.f32.mrb[46].mxu0  ;;  %v1959_v46 = vld [vmem:[%s2869_s8 + $0x1e0] sm:$0xff] }
 0x476   : > { %v1500_v50 = vadd.f32 %v1943_v45, %v1407_v14  ;;  %1564 = vst [vmem:[%s3001_s9 + $0x60] sm:$0xff] %v1407_v14  ;;  %v1411_v51 = vadd.f32 %v1410_v48, %v2864_v61  ;;  %v1412_v52 = vpop.f32.mrb[47].mxu0  ;;  %v1960_v48 = vld [vmem:[%s2869_s8 + $0x1e8] sm:$0xff] }
 0x477   : > { %v1501_v54 = vadd.f32 %v1944_v15, %v1409_v47  ;;  %1565 = vst [vmem:[%s3001_s9 + $0x68] sm:$0xff] %v1409_v47  ;;  %v1413_v55 = vadd.f32 %v1412_v52, %v2866_v62 }
 0x478   : > { %1532 = vst [vmem:[%s3009_s18 + $0x60] sm:$0xff] %v1500_v50  ;;  %v1502_v16 = vadd.f32 %v1945_v49, %v1411_v51  ;;  %1566 = vst [vmem:[%s3001_s9 + $0x70] sm:$0xff] %v1411_v51  ;;  %v1961_v51 = vld [vmem:[%s2869_s8 + $0x1f0] sm:$0xff] }
 0x479   : > { %1533 = vst [vmem:[%s3009_s18 + $0x68] sm:$0xff] %v1501_v54  ;;  %v1503_v1 = vadd.f32 %v1946_v53, %v1413_v55  ;;  %1567 = vst [vmem:[%s3001_s9 + $0x78] sm:$0xff] %v1413_v55  ;;  %v1962_v55 = vld [vmem:[%s2869_s8 + $0x1f8] sm:$0xff]  ;;  %s2305_s8 = sshll.u32 %s2428_s17, 4  ;;  %s2306_s8 = int_to_ptr.vmem [resolvable:$false] %s2305_s8 }
 0x47a   : > { %1534 = vst [vmem:[%s3009_s18 + $0x70] sm:$0xff] %v1502_v16  ;;  %s2307_s21 = scalar_lea.vmem %s2306_s8, 8192  ;;  %p2308_p1 = scmp.lt.s32.totalorder %s3131_s0, %s2306_s8 }
 0x47b   : > { %1535 = vst [vmem:[%s3009_s18 + $0x78] sm:$0xff] %v1503_v1  ;;  %v1416_v56 = vpop.f32.mrb[48].mxu0  ;;  %p2309_p4 = scmp.lt.s32.totalorder %s2307_s21, %s2301_s1 }
 0x47c   : > { %v1417_v57 = vadd.f32 %v1416_v56, %v2864_v61  ;;  %v1418_v7 = vpop.f32.mrb[49].mxu0 }
 0x47d   : > { %v1419_v18 = vadd.f32 %v1418_v7, %v2866_v62  ;;  %v1420_v2 = vpop.f32.mrb[50].mxu0  ;;  %p2310_p6 = por %p2309_p4, %p2308_p1 }
 0x47e   : > { %v1504_v59 = vadd.f32 %v1947_v17, %v1417_v57  ;;  %1568 = vst [vmem:[%s3001_s9 + $0x80] sm:$0xff] %v1417_v57  ;;  %v1421_v60 = vadd.f32 %v1420_v2, %v2864_v61  ;;  %v1422_v63 = vpop.f32.mrb[51].mxu0 }
 0x47f   : > { %v1505_v3 = vadd.f32 %v1948_v58, %v1419_v18  ;;  %1569 = vst [vmem:[%s3001_s9 + $0x88] sm:$0xff] %v1419_v18  ;;  %v1423_v9 = vadd.f32 %v1422_v63, %v2866_v62  ;;  %p2311_p12 = pnand %p2310_p6, %p2304_p10 }
 0x480   : > { %1536 = vst [vmem:[%s3009_s18 + $0x80] sm:$0xff] %v1504_v59  ;;  %v1506_v4 = vadd.f32 %v1949_v22, %v1421_v60  ;;  %1570 = vst [vmem:[%s3001_s9 + $0x90] sm:$0xff] %v1421_v60 }
 0x481   : > { %1537 = vst [vmem:[%s3009_s18 + $0x88] sm:$0xff] %v1505_v3  ;;  %v1507_v19 = vadd.f32 %v1950_v8, %v1423_v9  ;;  %1571 = vst [vmem:[%s3001_s9 + $0x98] sm:$0xff] %v1423_v9 }
 0x482   : > { %1538 = vst [vmem:[%s3009_s18 + $0x90] sm:$0xff] %v1506_v4 }
 0x483   : > { %1539 = vst [vmem:[%s3009_s18 + $0x98] sm:$0xff] %v1507_v19  ;;  %v1426_v0 = vpop.f32.mrb[52].mxu0 }
 0x484   : > { %v1427_v21 = vadd.f32 %v1426_v0, %v2864_v61  ;;  %v1428_v23 = vpop.f32.mrb[53].mxu0 }
 0x485   : > { %v1429_v25 = vadd.f32 %v1428_v23, %v2866_v62  ;;  %v1430_v5 = vpop.f32.mrb[54].mxu0 }
 0x486   : > { %v1508_v27 = vadd.f32 %v1951_v20, %v1427_v21  ;;  %1572 = vst [vmem:[%s3001_s9 + $0xa0] sm:$0xff] %v1427_v21  ;;  %v1431_v28 = vadd.f32 %v1430_v5, %v2864_v61  ;;  %v1432_v6 = vpop.f32.mrb[55].mxu0 }
 0x487   : > { %v1509_v30 = vadd.f32 %v1952_v24, %v1429_v25  ;;  %1573 = vst [vmem:[%s3001_s9 + $0xa8] sm:$0xff] %v1429_v25  ;;  %v1433_v31 = vadd.f32 %v1432_v6, %v2866_v62 }
 0x488   : > { %1540 = vst [vmem:[%s3009_s18 + $0xa0] sm:$0xff] %v1508_v27  ;;  %v1510_v10 = vadd.f32 %v1953_v26, %v1431_v28  ;;  %1574 = vst [vmem:[%s3001_s9 + $0xb0] sm:$0xff] %v1431_v28 }
 0x489   : > { %1541 = vst [vmem:[%s3009_s18 + $0xa8] sm:$0xff] %v1509_v30  ;;  %v1511_v32 = vadd.f32 %v1954_v29, %v1433_v31  ;;  %1575 = vst [vmem:[%s3001_s9 + $0xb8] sm:$0xff] %v1433_v31 }
 0x48a   : > { %1542 = vst [vmem:[%s3009_s18 + $0xb0] sm:$0xff] %v1510_v10 }
 0x48b   : > { %1543 = vst [vmem:[%s3009_s18 + $0xb8] sm:$0xff] %v1511_v32  ;;  %v1436_v11 = vpop.f32.mrb[64].mxu1 }
 0x48c   : > { %v1437_v34 = vadd.f32 %v1436_v11, %v2864_v61  ;;  %v1438_v35 = vpop.f32.mrb[65].mxu1 }
 0x48d   : > { %v1439_v37 = vadd.f32 %v1438_v35, %v2866_v62  ;;  %v1440_v38 = vpop.f32.mrb[66].mxu1 }
 0x48e   : > { %v1512_v12 = vadd.f32 %v1955_v33, %v1437_v34  ;;  %1576 = vst [vmem:[%s3001_s9 + $0xc0] sm:$0xff] %v1437_v34  ;;  %v1441_v40 = vadd.f32 %v1440_v38, %v2864_v61  ;;  %v1442_v41 = vpop.f32.mrb[67].mxu1 }
 0x48f   : > { %v1513_v13 = vadd.f32 %v1956_v36, %v1439_v37  ;;  %1577 = vst [vmem:[%s3001_s9 + $0xc8] sm:$0xff] %v1439_v37  ;;  %v1443_v43 = vadd.f32 %v1442_v41, %v2866_v62 }
 0x490   : > { %1544 = vst [vmem:[%s3009_s18 + $0xc0] sm:$0xff] %v1512_v12  ;;  %v1514_v44 = vadd.f32 %v1957_v39, %v1441_v40  ;;  %1578 = vst [vmem:[%s3001_s9 + $0xd0] sm:$0xff] %v1441_v40 }
 0x491   : > { %1545 = vst [vmem:[%s3009_s18 + $0xc8] sm:$0xff] %v1513_v13  ;;  %v1515_v45 = vadd.f32 %v1958_v42, %v1443_v43  ;;  %1579 = vst [vmem:[%s3001_s9 + $0xd8] sm:$0xff] %v1443_v43 }
 0x492   : > { %1546 = vst [vmem:[%s3009_s18 + $0xd0] sm:$0xff] %v1514_v44 }
 0x493   : > { %1547 = vst [vmem:[%s3009_s18 + $0xd8] sm:$0xff] %v1515_v45  ;;  %v1446_v14 = vpop.f32.mrb[68].mxu1 }
 0x494   : > { %v1447_v15 = vadd.f32 %v1446_v14, %v2864_v61  ;;  %v1448_v47 = vpop.f32.mrb[69].mxu1 }
 0x495   : > { %v1449_v49 = vadd.f32 %v1448_v47, %v2866_v62  ;;  %v1450_v50 = vpop.f32.mrb[70].mxu1 }
 0x496   : > { %v1516_v52 = vadd.f32 %v1959_v46, %v1447_v15  ;;  %1580 = vst [vmem:[%s3001_s9 + $0xe0] sm:$0xff] %v1447_v15  ;;  %v1451_v53 = vadd.f32 %v1450_v50, %v2864_v61  ;;  %v1452_v54 = vpop.f32.mrb[71].mxu1 }
 0x497   : > { %v1517_v16 = vadd.f32 %v1960_v48, %v1449_v49  ;;  %1581 = vst [vmem:[%s3001_s9 + $0xe8] sm:$0xff] %v1449_v49  ;;  %v1453_v1 = vadd.f32 %v1452_v54, %v2866_v62 }
 0x498   : > { %1548 = vst [vmem:[%s3009_s18 + $0xe0] sm:$0xff] %v1516_v52  ;;  %v1518_v61 = vadd.f32 %v1961_v51, %v1451_v53  ;;  %1582 = vst [vmem:[%s3001_s9 + $0xf0] sm:$0xff] %v1451_v53 }
 0x499   : > { %1549 = vst [vmem:[%s3009_s18 + $0xe8] sm:$0xff] %v1517_v16  ;;  %v1519_v56 = vadd.f32 %v1962_v55, %v1453_v1  ;;  %1583 = vst [vmem:[%s3001_s9 + $0xf8] sm:$0xff] %v1453_v1 }
 0x49a   : > { %1550 = vst [vmem:[%s3009_s18 + $0xf0] sm:$0xff] %v1518_v61 }
 0x49b   : > { %2314 = shalt.err (!%p2311_p12)
}
 0x49c   : > { %s2315_s23 = scalar_lea.hbm %s3129_s29, 4096  ;;  %s2319_s28 = scalar_lea.hbm %s3225_s7, 8192 }
 0x49d   : > { %p2316_p13 = scmp.ne.s32.totalorder %s3129_s29, %s2315_s23  ;;  %p2320_p5 = scmp.lt.u32.totalorder %s3129_s29, %s3225_s7 }
 0x49e   : > { %p2321_p3 = scmp.lt.u32.totalorder %s2319_s28, %s2315_s23  ;;  %p2323_p9 = scmp.lt.u32.totalorder %s2315_s23, %s3129_s29 }
 0x49f   : > { %p2317_p11 = pnand %p2316_p13, %p3251_p8 }
 0x4a0   : > { %p2322_p7 = por %p2321_p3, %p2320_p5 }
 0x4a1   : > { %p2318_p2 = pneg %p2317_p11 }
 0x4a2   : > { %p2324_p10 = por %p2323_p9, %p2322_p7 }
 0x4a4   : > { %p2325_p1 = pnand %p2324_p10, %p2318_p2 }
 0x4a6   : > { %2328 = shalt.err (!%p2325_p1)
}
 0x4a7   : > { %s2429_s12 = smov 256   ;;  %s2430_s1 = smov 16   ;;  %1551 = vst [vmem:[%s3009_s18 + $0xf8] sm:$0xff] %v1519_v56 }
 0x4a8   : > { %2023 = dma.vmem_to_hbm [thread:$0]  (%p3251_p8), %s3131_s0, 4096, %s3129_s29, %s1590_s20, %s2429_s12, %s2429_s12, %s2430_s1  }
 0x4a9   : > { %s1585_s17 = scalar_lea.sflag [#allocation4], %s2654_s16  ;;  %s2329_s8 = scalar_lea.vmem %s3142_s22, 4096 }
 0x4aa   : > { %p2330_p4 = scmp.ne.s32.totalorder %s3142_s22, %s2329_s8  ;;  %s2431_s21 = smov [#allocation9]  }
 0x4ab   : > { %s2333_s23 = sshll.u32 %s2431_s21, 4  ;;  %s2334_s23 = int_to_ptr.vmem [resolvable:$false] %s2333_s23 }
 0x4ac   : > { %p2331_p6 = pnand %p2330_p4, %p3251_p8  ;;  %s2335_s9 = scalar_lea.vmem %s2334_s23, 8192 }
 0x4ad   : > { %p2336_p13 = scmp.lt.s32.totalorder %s3142_s22, %s2334_s23  ;;  %p2337_p11 = scmp.lt.s32.totalorder %s2335_s9, %s2329_s8 }
 0x4ae   : > { %p2332_p12 = pneg %p2331_p6 }
 0x4af   : > { %p2338_p2 = por %p2337_p11, %p2336_p13 }
 0x4b1   : > { %p2339_p5 = pnand %p2338_p2, %p2332_p12 }
 0x4b3   : > { %2342 = shalt.err (!%p2339_p5)
}
 0x4b4   : > { %s2343_s18 = scalar_lea.hbm %s3140_s15, 4096  ;;  %s2347_s20 = scalar_lea.hbm %s3224_s6, 8192 }
 0x4b5   : > { %p2344_p3 = scmp.ne.s32.totalorder %s3140_s15, %s2343_s18  ;;  %p2348_p10 = scmp.lt.u32.totalorder %s3140_s15, %s3224_s6 }
 0x4b6   : > { %p2349_p1 = scmp.lt.u32.totalorder %s2347_s20, %s2343_s18  ;;  %p2351_p6 = scmp.lt.u32.totalorder %s2343_s18, %s3140_s15 }
 0x4b7   : > { %p2345_p7 = pnand %p2344_p3, %p3251_p8 }
 0x4b8   : > { %p2350_p4 = por %p2349_p1, %p2348_p10 }
 0x4b9   : > { %p2346_p9 = pneg %p2345_p7 }
 0x4ba   : > { %p2352_p12 = por %p2351_p6, %p2350_p4 }
 0x4bc   : > { %p2353_p13 = pnand %p2352_p12, %p2346_p9 }
 0x4be   : > { %2356 = shalt.err (!%p2353_p13)
}
 0x4bf   : > { %2022 = dma.vmem_to_hbm [thread:$0]  (%p3251_p8), %s3142_s22, 4096, %s3140_s15, %s1585_s17, %s2429_s12, %s2429_s12, %s2430_s1  }
 0x4c0 PF: > { %s1636_s19 = sand.u32 1, %s2395_s24   ;;  %p3252_p11 = scmp.ne.s32.totalorder %s3239_s14, 0 }
 0x4c1   : > { %s1637_s11 = scalar_lea.sflag [#allocation4], %s1636_s19 }
 0x4c2   : > { %p2031_p2 = pnand %p1779_p0, %p3252_p11 }
 0x4c4   : > { %2386 = dma.done.wait (!%p2031_p2), %s1637_s11, 4096  }
 0x4c5   : > { %2388 = vsyncadd (!%p2031_p2), %s1637_s11, 4294963200  ;;  %s1646_s13 = scalar_lea.sflag [#allocation11], %s1636_s19 }
 0x4c6   : > { %2390 = dma.done.wait (!%p2031_p2), %s1646_s13, 4096  }
 0x4c7   : > { %2392 = vsyncadd (!%p2031_p2), %s1646_s13, 4294963200  ;;  %s3253_s16 = sld [smem:[#allocation23_spill]]  ;;  %p25_p8 = scmp.ge.s32.totalorder %s2497_s30, 4  }
 0x4c8   : > { %s3254_s24 = smov %s2399_s25  ;;  %s3255_s25 = smov %s2403_s26 }
 0x4c9   : > { %s3257_s27 = smov %s2497_s30  ;;  %27 = sbr.rel (!%p25_p8) target bundleno = 11 (0xb), region = 144 }
 0x4cd   : > { %s3256_s26 = smov %s3253_s16 }
 0x4d0   :  { %1651 = vsyncpa [#allocation3], 1 }
 0x4d1   :  { %1653 = vsyncpa [#allocation3 + $0x1], 1 }
 0x4d2   :  { %1654 = vsyncpa [#allocation6], 1 }
 0x4d3   :  { %1655 = vsyncpa [#allocation4], 1 }
 0x4d4   :  { %1657 = vsyncpa [#allocation4 + $0x1], 1 }
 0x4d5   :  { %1658 = vsyncpa [#allocation11], 1 }
 0x4d6   :  { %1660 = vsyncpa [#allocation11 + $0x1], 1 }

</bundles_post_ra>
